<compile_context>
chip_gen: v7x
topology: tpu7x:2x2x1
jax: 0.10.0
libtpu: 0.0.40
codegen_flags: <defaults>
</compile_context>

<pallas_src>
import functools

import jax
import jax.numpy as jnp
import numpy as np
from jax.experimental import pallas as pl
from jax.experimental.pallas import tpu as pltpu


T_BLOCK_MAX = 32  # max timesteps per grid iteration (multiple of 8)


# ----------------------------------------------------------------------------
# Recurrent Pallas kernel (serial part only)
# ----------------------------------------------------------------------------
def _gru_recurrence_kernel(
    pre_ref,    # (t_block, B_SHARD, 4H) f32 : [pre_r | pre_u | pre_c | gate]
    w_r_ref,    # (H, H) bf16                : Wr_h
    w_u_ref,    # (H, H) bf16                : Wu_h
    w_c_ref,    # (H, H) bf16                : Wc_h
    out_ref,    # (1, B_SHARD, t_block*H) f32: lane-dense output slab
    state_ref,  # (B_SHARD, H) f32 scratch   : carried hidden state
    *,
    t_block,
    hidden,
):
    H = hidden

    # First time-block of this batch shard -> zero initial state.
    @pl.when(pl.program_id(1) == 0)
    def _():
        state_ref[...] = jnp.zeros_like(state_ref)

    # Resident recurrent weights (bf16 -> single MXU pass per dot).
    # TODO(synk): could additionally be pinned in the MXU staging registers via
    # pltpu.matmul_push_rhs / matmul_acc_lhs / matmul_pop.
    w_r = w_r_ref[...]
    w_u = w_u_ref[...]
    w_c = w_c_ref[...]

    h = state_ref[...]
    # Fully unrolled: `t` is a Python constant, so every slice below is static
    # (no dynamic lane indexing on the serial critical path).
    for t in range(t_block):
        pre = pre_ref[t]                     # (B_SHARD, 4H) - one lane-dense tile
        pre_r = pre[:, 0 * H:1 * H]
        pre_u = pre[:, 1 * H:2 * H]
        pre_c = pre[:, 2 * H:3 * H]
        gate = pre[:, 3 * H:4 * H]

        h_b = h.astype(jnp.bfloat16)
        # Two separate small dots (instead of one fused (H,2H) dot) so no
        # mid-vreg lane split of the r|u result is needed when H % 128 != 0.
        r = jax.nn.sigmoid(
            pre_r + jnp.dot(h_b, w_r, preferred_element_type=jnp.float32))
        u = jax.nn.sigmoid(
            pre_u + jnp.dot(h_b, w_u, preferred_element_type=jnp.float32))
        c = jnp.tanh(
            pre_c + jnp.dot((r * h).astype(jnp.bfloat16), w_c,
                            preferred_element_type=jnp.float32))
        h = u * h + (1.0 - u) * c * gate
        out_ref[0, :, t * H:(t + 1) * H] = h

    state_ref[...] = h


# ----------------------------------------------------------------------------
# Wrapper: hoisted pre-pass (XLA) + Pallas recurrence
# ----------------------------------------------------------------------------
@jax.jit
def gru_heur_long_pro(x, masks, params):
    """x: (B, L, E) f32, masks: (B, L, L) f32.  Returns ((B, L, H), (B, H))."""
    B, L, E = x.shape
    H = params["br"].shape[-1]

    # ---------------- hoisted, state-independent pre-pass (big matmuls) ------
    count = jnp.maximum(jnp.sum(masks, axis=-1, keepdims=True), 1.0)       # (B,L,1)
    # TODO(synk): for long L the (B,L,L)x(B,L,E) product dominates HBM traffic
    # and could use bf16 operands (masks are exact in bf16); kept f32 here.
    neighbors = jnp.einsum("blj,bje->ble", masks, x) / count               # (B,L,E)

    # One (E, 4H) matmul for every x-side projection: [Wr_x | Wu_x | Wc_x | W1]
    wx = jnp.concatenate(
        [params["wr_x"], params["wu_x"], params["wc_x"], params["w1"]], axis=1)
    bx = jnp.concatenate(
        [params["br"], params["bu"], params["bc"], params["b1"]], axis=1)
    proj = jnp.einsum("ble,eh->blh", x, wx) + bx                           # (B,L,4H)

    semantic_emb = jax.nn.relu(proj[..., 3 * H:])                          # (B,L,H)
    neighbor_emb = jax.nn.relu(
        jnp.einsum("ble,eh->blh", neighbors, params["w2"]) + params["b2"])
    # Single fused gate matmul: [sem | nbr] @ [Wg_s ; Wg_n]
    gate_in = jnp.concatenate([semantic_emb, neighbor_emb], axis=-1)       # (B,L,2H)
    wg = jnp.concatenate([params["wg_s"], params["wg_n"]], axis=0)         # (2H,H)
    new_gate = jax.nn.sigmoid(
        jnp.einsum("blk,kh->blh", gate_in, wg) + params["bg"])             # (B,L,H)

    # Lane-dense stream for the recurrence: [pre_r | pre_u | pre_c | gate].
    pre_all = jnp.concatenate([proj[..., :3 * H], new_gate], axis=-1)      # (B,L,4H)

    # Recurrent weights in bf16 (MXU-native single pass); accumulation stays f32.
    w_r = params["wr_h"].astype(jnp.bfloat16)
    w_u = params["wu_h"].astype(jnp.bfloat16)
    w_c = params["wc_h"].astype(jnp.bfloat16)

    # ---------------- padding / sharding / time-major layout -----------------
    t_block = min(T_BLOCK_MAX, ((L + 7) // 8) * 8)
    Lp = ((L + t_block - 1) // t_block) * t_block
    if B > 8:                          # two batch shards -> v7x dual TensorCore
        Bp = ((B + 15) // 16) * 16
        b_shard = Bp // 2
    else:
        Bp, b_shard = 8, 8
    nb, nt = Bp // b_shard, Lp // t_block

    pre_tm = jnp.pad(jnp.transpose(pre_all, (1, 0, 2)),
                     ((0, Lp - L), (0, Bp - B), (0, 0)))                   # (Lp,Bp,4H)

    kernel = functools.partial(_gru_recurrence_kernel, t_block=t_block, hidden=H)

    out_dense = pl.pallas_call(
        kernel,
        out_shape=jax.ShapeDtypeStruct((nt, Bp, t_block * H), jnp.float32),
        grid_spec=pltpu.PrefetchScalarGridSpec(
            num_scalar_prefetch=0,
            grid=(nb, nt),
            in_specs=[
                pl.BlockSpec((t_block, b_shard, 4 * H), lambda b, t: (t, b, 0)),
                pl.BlockSpec((H, H), lambda b, t: (0, 0)),   # resident weights
                pl.BlockSpec((H, H), lambda b, t: (0, 0)),
                pl.BlockSpec((H, H), lambda b, t: (0, 0)),
            ],
            out_specs=pl.BlockSpec((1, b_shard, t_block * H),
                                   lambda b, t: (t, b, 0)),
            scratch_shapes=[pltpu.VMEM((b_shard, H), jnp.float32)],
        ),
        compiler_params=pltpu.CompilerParams(
            dimension_semantics=("parallel", "arbitrary"),  # batch || , time seq
            vmem_limit_bytes=32 * 1024 * 1024,              # safe on v5e/v6e/v7x
        ),
    )(pre_tm, w_r, w_u, w_c)

    # Unpack the lane-dense output: (nt, Bp, t_block*H) -> (B, L, H).
    out = out_dense.reshape(nt, Bp, t_block, H)
    out = jnp.transpose(out, (1, 0, 2, 3)).reshape(Bp, Lp, H)
    outputs = out[:B, :L]                                    # (B, L, H)
    h_final = outputs[:, L - 1, :]                           # (B, H)
    return outputs, h_final


# ----------------------------------------------------------------------------
# Deterministic parameter init (PyTorch Linear-style uniform bounds)
# ----------------------------------------------------------------------------
def init_params(key, input_size, hidden_size):
    E = input_size // 2
    H = hidden_size

    def linear(key, fan_in, shape_w, shape_b):
        kw, kb = jax.random.split(key)
        bound = 1.0 / np.sqrt(fan_in)
        w = jax.random.uniform(kw, shape_w, jnp.float32, -bound, bound)
        b = jax.random.uniform(kb, shape_b, jnp.float32, -bound, bound)
        return w, b

    keys = jax.random.split(key, 6)
    # concat-linears split into (x-part, h-part); weights stored (in, out)
    wr, br = linear(keys[0], E + H, (E + H, H), (1, H))
    wu, bu = linear(keys[1], E + H, (E + H, H), (1, H))
    wc, bc = linear(keys[2], E + H, (E + H, H), (1, H))
    w1, b1 = linear(keys[3], E, (E, H), (1, H))
    w2, b2 = linear(keys[4], E, (E, H), (1, H))
    wg, bg = linear(keys[5], 2 * H, (2 * H, H), (1, H))
    # TODO(synk): tmp1/tmp2 and new_r_gate in the PyTorch module are unused in
    # the forward pass, so they are not instantiated here.
    return dict(
        wr_x=wr[:E], wr_h=wr[E:], br=br,
        wu_x=wu[:E], wu_h=wu[E:], bu=bu,
        wc_x=wc[:E], wc_h=wc[E:], bc=bc,
        w1=w1, b1=b1, w2=w2, b2=b2,
        wg_s=wg[:H], wg_n=wg[H:], bg=bg,
    )


# ----------------------------------------------------------------------------
# Pure-JAX reference (mirrors the PyTorch forward, all f32)
# ----------------------------------------------------------------------------
def reference(x, masks, p):
    B, L, E = x.shape
    H = p["br"].shape[-1]
    h = jnp.zeros((B, H), jnp.float32)
    outs = []
    for l in range(L):
        m = masks[:, l, :]
        cnt = jnp.maximum(m.sum(-1, keepdims=True), 1.0)
        neigh = (m[:, :, None] * x).sum(1) / cnt
        xl = x[:, l, :]
        r = jax.nn.sigmoid(xl @ p["wr_x"] + h @ p["wr_h"] + p["br"])
        u = jax.nn.sigmoid(xl @ p["wu_x"] + h @ p["wu_h"] + p["bu"])
        c = jnp.tanh(xl @ p["wc_x"] + (r * h) @ p["wc_h"] + p["bc"])
        s_emb = jnp.maximum(xl @ p["w1"] + p["b1"], 0.0)
        n_emb = jnp.maximum(neigh @ p["w2"] + p["b2"], 0.0)
        g = jax.nn.sigmoid(s_emb @ p["wg_s"] + n_emb @ p["wg_n"] + p["bg"])
        h = u * h + (1.0 - u) * c * g
        outs.append(h)
    return jnp.stack(outs, 1), h


if __name__ == "__main__":
    # small shapes consistent with the module:
    #   input_size = 16 -> embedding_size E = 8, hidden_size H = 32
    #   x: (batch=2, length=8, E=8), masks: (2, 8, 8)
    B, L, E, H = 2, 8, 8, 32
    input_size = 2 * E

    key = jax.random.PRNGKey(0)
    kx, km, kp = jax.random.split(key, 3)

    x = jax.random.normal(kx, (B, L, E), jnp.float32)
    masks = jax.random.bernoulli(km, 0.5, (B, L, L)).astype(jnp.float32)
    params = init_params(kp, input_size, H)

    outputs, h_final = gru_heur_long_pro(x, masks, params)
    jax.block_until_ready((outputs, h_final))

    ref_out, ref_h = reference(x, masks, params)
    assert outputs.shape == (B, L, H) and h_final.shape == (B, H)
    # Tolerances relaxed because the recurrent matmuls use bf16 MXU operands
    # (f32 accumulation and f32 elementwise math).
    np.testing.assert_allclose(np.asarray(outputs), np.asarray(ref_out),
                               rtol=2e-2, atol=2e-2)
    np.testing.assert_allclose(np.asarray(h_final), np.asarray(ref_h),
                               rtol=2e-2, atol=2e-2)

    print("KERNEL_OK")
</pallas_src>

<mosaic_0001>
module attributes {stable_mosaic.version = 11 : i64} {
  func.func @_gru_recurrence_kernel(%arg0: i32, %arg1: i32, %arg2: memref<8x8x128xf32, #tpu.memory_space<vmem>>, %arg3: memref<32x32xbf16, #tpu.memory_space<vmem>>, %arg4: memref<32x32xbf16, #tpu.memory_space<vmem>>, %arg5: memref<32x32xbf16, #tpu.memory_space<vmem>>, %arg6: memref<1x8x256xf32, #tpu.memory_space<vmem>>, %arg7: memref<8x32xf32, #tpu.memory_space<vmem>>) attributes {dimension_semantics = [#tpu.dimension_semantics<parallel>, #tpu.dimension_semantics<arbitrary>], iteration_bounds = array<i64: 1, 1>, scalar_prefetch = 0 : i64, scratch_operands = 1 : i64, tpu.core_type = #tpu.core_type<tc>, window_params = [{transform_indices = @transform_0, window_bounds = array<i64: 8, 8, 128>}, {pipeline_mode = #tpu.pipeline_mode<synchronous>, transform_indices = @transform_1, window_bounds = array<i64: 32, 32>}, {pipeline_mode = #tpu.pipeline_mode<synchronous>, transform_indices = @transform_2, window_bounds = array<i64: 32, 32>}, {pipeline_mode = #tpu.pipeline_mode<synchronous>, transform_indices = @transform_3, window_bounds = array<i64: 32, 32>}, {transform_indices = @transform_4, window_bounds = array<i64: 1, 8, 256>}]} {
    %c0_i32 = arith.constant 0 : i32
    %0 = arith.cmpi eq, %arg1, %c0_i32 : i32
    %1 = arith.extui %0 : i1 to i32
    %c0_i32_0 = arith.constant 0 : i32
    %2 = arith.cmpi ne, %1, %c0_i32_0 : i32
    scf.if %2 {
      %cst_91 = arith.constant 0.000000e+00 : f32
      %288 = vector.broadcast %cst_91 : f32 to vector<8x32xf32>
      %c0_92 = arith.constant 0 : index
      %c0_93 = arith.constant 0 : index
      %289 = vector.load %arg7[%c0_92, %c0_93] : memref<8x32xf32, #tpu.memory_space<vmem>>, vector<8x32xf32>
      tpu.vector_store %arg7[%c0_92, %c0_93], %288 {strides = array<i32>} : memref<8x32xf32, #tpu.memory_space<vmem>>, vector<8x32xf32>,
    } else {
    }
    %c0 = arith.constant 0 : index
    %c0_1 = arith.constant 0 : index
    %3 = vector.load %arg3[%c0, %c0_1] : memref<32x32xbf16, #tpu.memory_space<vmem>>, vector<32x32xbf16>
    %c0_2 = arith.constant 0 : index
    %c0_3 = arith.constant 0 : index
    %4 = vector.load %arg4[%c0_2, %c0_3] : memref<32x32xbf16, #tpu.memory_space<vmem>>, vector<32x32xbf16>
    %c0_4 = arith.constant 0 : index
    %c0_5 = arith.constant 0 : index
    %5 = vector.load %arg5[%c0_4, %c0_5] : memref<32x32xbf16, #tpu.memory_space<vmem>>, vector<32x32xbf16>
    %c0_6 = arith.constant 0 : index
    %c0_7 = arith.constant 0 : index
    %6 = vector.load %arg7[%c0_6, %c0_7] : memref<8x32xf32, #tpu.memory_space<vmem>>, vector<8x32xf32>
    %c0_8 = arith.constant 0 : index
    %c0_9 = arith.constant 0 : index
    %c0_10 = arith.constant 0 : index
    %7 = vector.load %arg2[%c0_8, %c0_9, %c0_10] : memref<8x8x128xf32, #tpu.memory_space<vmem>>, vector<1x8x128xf32>
    %8 = vector.shape_cast %7 : vector<1x8x128xf32> to vector<8x128xf32>
    %9 = vector.extract_strided_slice %8 {offsets = [0, 0], sizes = [8, 32], strides = [1, 1]} : vector<8x128xf32> to vector<8x32xf32>
    %10 = vector.extract_strided_slice %8 {offsets = [0, 32], sizes = [8, 32], strides = [1, 1]} : vector<8x128xf32> to vector<8x32xf32>
    %11 = vector.extract_strided_slice %8 {offsets = [0, 64], sizes = [8, 32], strides = [1, 1]} : vector<8x128xf32> to vector<8x32xf32>
    %12 = vector.extract_strided_slice %8 {offsets = [0, 96], sizes = [8, 32], strides = [1, 1]} : vector<8x128xf32> to vector<8x32xf32>
    %13 = arith.truncf %6 : vector<8x32xf32> to vector<8x32xbf16>
    %cst = arith.constant dense<0.000000e+00> : vector<8x32xf32>
    %14 = tpu.matmul %13, %3, %cst {dimension_numbers = #tpu.dot_dimension_numbers<[1], [0], [0], [1], [0, 0, 1, 1], [], []>} : vector<8x32xbf16>, vector<32x32xbf16>, vector<8x32xf32> -> vector<8x32xf32>
    %15 = arith.addf %9, %14 : vector<8x32xf32>
    %16 = arith.negf %15 : vector<8x32xf32>
    %17 = math.exp %16 : vector<8x32xf32>
    %cst_11 = arith.constant 1.000000e+00 : f32
    %18 = vector.broadcast %cst_11 : f32 to vector<8x32xf32>
    %19 = arith.addf %18, %17 : vector<8x32xf32>
    %20 = arith.divf %18, %19 : vector<8x32xf32>
    %cst_12 = arith.constant dense<0.000000e+00> : vector<8x32xf32>
    %21 = tpu.matmul %13, %4, %cst_12 {dimension_numbers = #tpu.dot_dimension_numbers<[1], [0], [0], [1], [0, 0, 1, 1], [], []>} : vector<8x32xbf16>, vector<32x32xbf16>, vector<8x32xf32> -> vector<8x32xf32>
    %22 = arith.addf %10, %21 : vector<8x32xf32>
    %23 = arith.negf %22 : vector<8x32xf32>
    %24 = math.exp %23 : vector<8x32xf32>
    %cst_13 = arith.constant 1.000000e+00 : f32
    %25 = vector.broadcast %cst_13 : f32 to vector<8x32xf32>
    %26 = arith.addf %25, %24 : vector<8x32xf32>
    %27 = arith.divf %25, %26 : vector<8x32xf32>
    %28 = arith.mulf %20, %6 : vector<8x32xf32>
    %29 = arith.truncf %28 : vector<8x32xf32> to vector<8x32xbf16>
    %cst_14 = arith.constant dense<0.000000e+00> : vector<8x32xf32>
    %30 = tpu.matmul %29, %5, %cst_14 {dimension_numbers = #tpu.dot_dimension_numbers<[1], [0], [0], [1], [0, 0, 1, 1], [], []>} : vector<8x32xbf16>, vector<32x32xbf16>, vector<8x32xf32> -> vector<8x32xf32>
    %31 = arith.addf %11, %30 : vector<8x32xf32>
    %32 = math.tanh %31 : vector<8x32xf32>
    %33 = arith.mulf %27, %6 : vector<8x32xf32>
    %cst_15 = arith.constant 1.000000e+00 : f32
    %34 = vector.broadcast %cst_15 : f32 to vector<8x32xf32>
    %35 = arith.subf %34, %27 : vector<8x32xf32>
    %36 = arith.mulf %35, %32 : vector<8x32xf32>
    %37 = arith.mulf %36, %12 : vector<8x32xf32>
    %38 = arith.addf %33, %37 : vector<8x32xf32>
    %c0_16 = arith.constant 0 : index
    %c0_17 = arith.constant 0 : index
    %c0_18 = arith.constant 0 : index
    %39 = vector.load %arg6[%c0_16, %c0_17, %c0_18] : memref<1x8x256xf32, #tpu.memory_space<vmem>>, vector<1x8x32xf32>
    %40 = vector.shape_cast %39 : vector<1x8x32xf32> to vector<8x32xf32>
    %41 = vector.shape_cast %38 : vector<8x32xf32> to vector<1x8x32xf32>
    tpu.vector_store %arg6[%c0_16, %c0_17, %c0_18], %41 {strides = array<i32>} : memref<1x8x256xf32, #tpu.memory_space<vmem>>, vector<1x8x32xf32>,
    %c1 = arith.constant 1 : index
    %c0_19 = arith.constant 0 : index
    %c0_20 = arith.constant 0 : index
    %42 = vector.load %arg2[%c1, %c0_19, %c0_20] : memref<8x8x128xf32, #tpu.memory_space<vmem>>, vector<1x8x128xf32>
    %43 = vector.shape_cast %42 : vector<1x8x128xf32> to vector<8x128xf32>
    %44 = vector.extract_strided_slice %43 {offsets = [0, 0], sizes = [8, 32], strides = [1, 1]} : vector<8x128xf32> to vector<8x32xf32>
    %45 = vector.extract_strided_slice %43 {offsets = [0, 32], sizes = [8, 32], strides = [1, 1]} : vector<8x128xf32> to vector<8x32xf32>
    %46 = vector.extract_strided_slice %43 {offsets = [0, 64], sizes = [8, 32], strides = [1, 1]} : vector<8x128xf32> to vector<8x32xf32>
    %47 = vector.extract_strided_slice %43 {offsets = [0, 96], sizes = [8, 32], strides = [1, 1]} : vector<8x128xf32> to vector<8x32xf32>
    %48 = arith.truncf %38 : vector<8x32xf32> to vector<8x32xbf16>
    %cst_21 = arith.constant dense<0.000000e+00> : vector<8x32xf32>
    %49 = tpu.matmul %48, %3, %cst_21 {dimension_numbers = #tpu.dot_dimension_numbers<[1], [0], [0], [1], [0, 0, 1, 1], [], []>} : vector<8x32xbf16>, vector<32x32xbf16>, vector<8x32xf32> -> vector<8x32xf32>
    %50 = arith.addf %44, %49 : vector<8x32xf32>
    %51 = arith.negf %50 : vector<8x32xf32>
    %52 = math.exp %51 : vector<8x32xf32>
    %cst_22 = arith.constant 1.000000e+00 : f32
    %53 = vector.broadcast %cst_22 : f32 to vector<8x32xf32>
    %54 = arith.addf %53, %52 : vector<8x32xf32>
    %55 = arith.divf %53, %54 : vector<8x32xf32>
    %cst_23 = arith.constant dense<0.000000e+00> : vector<8x32xf32>
    %56 = tpu.matmul %48, %4, %cst_23 {dimension_numbers = #tpu.dot_dimension_numbers<[1], [0], [0], [1], [0, 0, 1, 1], [], []>} : vector<8x32xbf16>, vector<32x32xbf16>, vector<8x32xf32> -> vector<8x32xf32>
    %57 = arith.addf %45, %56 : vector<8x32xf32>
    %58 = arith.negf %57 : vector<8x32xf32>
    %59 = math.exp %58 : vector<8x32xf32>
    %cst_24 = arith.constant 1.000000e+00 : f32
    %60 = vector.broadcast %cst_24 : f32 to vector<8x32xf32>
    %61 = arith.addf %60, %59 : vector<8x32xf32>
    %62 = arith.divf %60, %61 : vector<8x32xf32>
    %63 = arith.mulf %55, %38 : vector<8x32xf32>
    %64 = arith.truncf %63 : vector<8x32xf32> to vector<8x32xbf16>
    %cst_25 = arith.constant dense<0.000000e+00> : vector<8x32xf32>
    %65 = tpu.matmul %64, %5, %cst_25 {dimension_numbers = #tpu.dot_dimension_numbers<[1], [0], [0], [1], [0, 0, 1, 1], [], []>} : vector<8x32xbf16>, vector<32x32xbf16>, vector<8x32xf32> -> vector<8x32xf32>
    %66 = arith.addf %46, %65 : vector<8x32xf32>
    %67 = math.tanh %66 : vector<8x32xf32>
    %68 = arith.mulf %62, %38 : vector<8x32xf32>
    %cst_26 = arith.constant 1.000000e+00 : f32
    %69 = vector.broadcast %cst_26 : f32 to vector<8x32xf32>
    %70 = arith.subf %69, %62 : vector<8x32xf32>
    %71 = arith.mulf %70, %67 : vector<8x32xf32>
    %72 = arith.mulf %71, %47 : vector<8x32xf32>
    %73 = arith.addf %68, %72 : vector<8x32xf32>
    %c0_27 = arith.constant 0 : index
    %c0_28 = arith.constant 0 : index
    %c32 = arith.constant 32 : index
    %74 = vector.load %arg6[%c0_27, %c0_28, %c32] : memref<1x8x256xf32, #tpu.memory_space<vmem>>, vector<1x8x32xf32>
    %75 = vector.shape_cast %74 : vector<1x8x32xf32> to vector<8x32xf32>
    %76 = vector.shape_cast %73 : vector<8x32xf32> to vector<1x8x32xf32>
    tpu.vector_store %arg6[%c0_27, %c0_28, %c32], %76 {strides = array<i32>} : memref<1x8x256xf32, #tpu.memory_space<vmem>>, vector<1x8x32xf32>,
    %c2 = arith.constant 2 : index
    %c0_29 = arith.constant 0 : index
    %c0_30 = arith.constant 0 : index
    %77 = vector.load %arg2[%c2, %c0_29, %c0_30] : memref<8x8x128xf32, #tpu.memory_space<vmem>>, vector<1x8x128xf32>
    %78 = vector.shape_cast %77 : vector<1x8x128xf32> to vector<8x128xf32>
    %79 = vector.extract_strided_slice %78 {offsets = [0, 0], sizes = [8, 32], strides = [1, 1]} : vector<8x128xf32> to vector<8x32xf32>
    %80 = vector.extract_strided_slice %78 {offsets = [0, 32], sizes = [8, 32], strides = [1, 1]} : vector<8x128xf32> to vector<8x32xf32>
    %81 = vector.extract_strided_slice %78 {offsets = [0, 64], sizes = [8, 32], strides = [1, 1]} : vector<8x128xf32> to vector<8x32xf32>
    %82 = vector.extract_strided_slice %78 {offsets = [0, 96], sizes = [8, 32], strides = [1, 1]} : vector<8x128xf32> to vector<8x32xf32>
    %83 = arith.truncf %73 : vector<8x32xf32> to vector<8x32xbf16>
    %cst_31 = arith.constant dense<0.000000e+00> : vector<8x32xf32>
    %84 = tpu.matmul %83, %3, %cst_31 {dimension_numbers = #tpu.dot_dimension_numbers<[1], [0], [0], [1], [0, 0, 1, 1], [], []>} : vector<8x32xbf16>, vector<32x32xbf16>, vector<8x32xf32> -> vector<8x32xf32>
    %85 = arith.addf %79, %84 : vector<8x32xf32>
    %86 = arith.negf %85 : vector<8x32xf32>
    %87 = math.exp %86 : vector<8x32xf32>
    %cst_32 = arith.constant 1.000000e+00 : f32
    %88 = vector.broadcast %cst_32 : f32 to vector<8x32xf32>
    %89 = arith.addf %88, %87 : vector<8x32xf32>
    %90 = arith.divf %88, %89 : vector<8x32xf32>
    %cst_33 = arith.constant dense<0.000000e+00> : vector<8x32xf32>
    %91 = tpu.matmul %83, %4, %cst_33 {dimension_numbers = #tpu.dot_dimension_numbers<[1], [0], [0], [1], [0, 0, 1, 1], [], []>} : vector<8x32xbf16>, vector<32x32xbf16>, vector<8x32xf32> -> vector<8x32xf32>
    %92 = arith.addf %80, %91 : vector<8x32xf32>
    %93 = arith.negf %92 : vector<8x32xf32>
    %94 = math.exp %93 : vector<8x32xf32>
    %cst_34 = arith.constant 1.000000e+00 : f32
    %95 = vector.broadcast %cst_34 : f32 to vector<8x32xf32>
    %96 = arith.addf %95, %94 : vector<8x32xf32>
    %97 = arith.divf %95, %96 : vector<8x32xf32>
    %98 = arith.mulf %90, %73 : vector<8x32xf32>
    %99 = arith.truncf %98 : vector<8x32xf32> to vector<8x32xbf16>
    %cst_35 = arith.constant dense<0.000000e+00> : vector<8x32xf32>
    %100 = tpu.matmul %99, %5, %cst_35 {dimension_numbers = #tpu.dot_dimension_numbers<[1], [0], [0], [1], [0, 0, 1, 1], [], []>} : vector<8x32xbf16>, vector<32x32xbf16>, vector<8x32xf32> -> vector<8x32xf32>
    %101 = arith.addf %81, %100 : vector<8x32xf32>
    %102 = math.tanh %101 : vector<8x32xf32>
    %103 = arith.mulf %97, %73 : vector<8x32xf32>
    %cst_36 = arith.constant 1.000000e+00 : f32
    %104 = vector.broadcast %cst_36 : f32 to vector<8x32xf32>
    %105 = arith.subf %104, %97 : vector<8x32xf32>
    %106 = arith.mulf %105, %102 : vector<8x32xf32>
    %107 = arith.mulf %106, %82 : vector<8x32xf32>
    %108 = arith.addf %103, %107 : vector<8x32xf32>
    %c0_37 = arith.constant 0 : index
    %c0_38 = arith.constant 0 : index
    %c64 = arith.constant 64 : index
    %109 = vector.load %arg6[%c0_37, %c0_38, %c64] : memref<1x8x256xf32, #tpu.memory_space<vmem>>, vector<1x8x32xf32>
    %110 = vector.shape_cast %109 : vector<1x8x32xf32> to vector<8x32xf32>
    %111 = vector.shape_cast %108 : vector<8x32xf32> to vector<1x8x32xf32>
    tpu.vector_store %arg6[%c0_37, %c0_38, %c64], %111 {strides = array<i32>} : memref<1x8x256xf32, #tpu.memory_space<vmem>>, vector<1x8x32xf32>,
    %c3 = arith.constant 3 : index
    %c0_39 = arith.constant 0 : index
    %c0_40 = arith.constant 0 : index
    %112 = vector.load %arg2[%c3, %c0_39, %c0_40] : memref<8x8x128xf32, #tpu.memory_space<vmem>>, vector<1x8x128xf32>
    %113 = vector.shape_cast %112 : vector<1x8x128xf32> to vector<8x128xf32>
    %114 = vector.extract_strided_slice %113 {offsets = [0, 0], sizes = [8, 32], strides = [1, 1]} : vector<8x128xf32> to vector<8x32xf32>
    %115 = vector.extract_strided_slice %113 {offsets = [0, 32], sizes = [8, 32], strides = [1, 1]} : vector<8x128xf32> to vector<8x32xf32>
    %116 = vector.extract_strided_slice %113 {offsets = [0, 64], sizes = [8, 32], strides = [1, 1]} : vector<8x128xf32> to vector<8x32xf32>
    %117 = vector.extract_strided_slice %113 {offsets = [0, 96], sizes = [8, 32], strides = [1, 1]} : vector<8x128xf32> to vector<8x32xf32>
    %118 = arith.truncf %108 : vector<8x32xf32> to vector<8x32xbf16>
    %cst_41 = arith.constant dense<0.000000e+00> : vector<8x32xf32>
    %119 = tpu.matmul %118, %3, %cst_41 {dimension_numbers = #tpu.dot_dimension_numbers<[1], [0], [0], [1], [0, 0, 1, 1], [], []>} : vector<8x32xbf16>, vector<32x32xbf16>, vector<8x32xf32> -> vector<8x32xf32>
    %120 = arith.addf %114, %119 : vector<8x32xf32>
    %121 = arith.negf %120 : vector<8x32xf32>
    %122 = math.exp %121 : vector<8x32xf32>
    %cst_42 = arith.constant 1.000000e+00 : f32
    %123 = vector.broadcast %cst_42 : f32 to vector<8x32xf32>
    %124 = arith.addf %123, %122 : vector<8x32xf32>
    %125 = arith.divf %123, %124 : vector<8x32xf32>
    %cst_43 = arith.constant dense<0.000000e+00> : vector<8x32xf32>
    %126 = tpu.matmul %118, %4, %cst_43 {dimension_numbers = #tpu.dot_dimension_numbers<[1], [0], [0], [1], [0, 0, 1, 1], [], []>} : vector<8x32xbf16>, vector<32x32xbf16>, vector<8x32xf32> -> vector<8x32xf32>
    %127 = arith.addf %115, %126 : vector<8x32xf32>
    %128 = arith.negf %127 : vector<8x32xf32>
    %129 = math.exp %128 : vector<8x32xf32>
    %cst_44 = arith.constant 1.000000e+00 : f32
    %130 = vector.broadcast %cst_44 : f32 to vector<8x32xf32>
    %131 = arith.addf %130, %129 : vector<8x32xf32>
    %132 = arith.divf %130, %131 : vector<8x32xf32>
    %133 = arith.mulf %125, %108 : vector<8x32xf32>
    %134 = arith.truncf %133 : vector<8x32xf32> to vector<8x32xbf16>
    %cst_45 = arith.constant dense<0.000000e+00> : vector<8x32xf32>
    %135 = tpu.matmul %134, %5, %cst_45 {dimension_numbers = #tpu.dot_dimension_numbers<[1], [0], [0], [1], [0, 0, 1, 1], [], []>} : vector<8x32xbf16>, vector<32x32xbf16>, vector<8x32xf32> -> vector<8x32xf32>
    %136 = arith.addf %116, %135 : vector<8x32xf32>
    %137 = math.tanh %136 : vector<8x32xf32>
    %138 = arith.mulf %132, %108 : vector<8x32xf32>
    %cst_46 = arith.constant 1.000000e+00 : f32
    %139 = vector.broadcast %cst_46 : f32 to vector<8x32xf32>
    %140 = arith.subf %139, %132 : vector<8x32xf32>
    %141 = arith.mulf %140, %137 : vector<8x32xf32>
    %142 = arith.mulf %141, %117 : vector<8x32xf32>
    %143 = arith.addf %138, %142 : vector<8x32xf32>
    %c0_47 = arith.constant 0 : index
    %c0_48 = arith.constant 0 : index
    %c96 = arith.constant 96 : index
    %144 = vector.load %arg6[%c0_47, %c0_48, %c96] : memref<1x8x256xf32, #tpu.memory_space<vmem>>, vector<1x8x32xf32>
    %145 = vector.shape_cast %144 : vector<1x8x32xf32> to vector<8x32xf32>
    %146 = vector.shape_cast %143 : vector<8x32xf32> to vector<1x8x32xf32>
    tpu.vector_store %arg6[%c0_47, %c0_48, %c96], %146 {strides = array<i32>} : memref<1x8x256xf32, #tpu.memory_space<vmem>>, vector<1x8x32xf32>,
    %c4 = arith.constant 4 : index
    %c0_49 = arith.constant 0 : index
    %c0_50 = arith.constant 0 : index
    %147 = vector.load %arg2[%c4, %c0_49, %c0_50] : memref<8x8x128xf32, #tpu.memory_space<vmem>>, vector<1x8x128xf32>
    %148 = vector.shape_cast %147 : vector<1x8x128xf32> to vector<8x128xf32>
    %149 = vector.extract_strided_slice %148 {offsets = [0, 0], sizes = [8, 32], strides = [1, 1]} : vector<8x128xf32> to vector<8x32xf32>
    %150 = vector.extract_strided_slice %148 {offsets = [0, 32], sizes = [8, 32], strides = [1, 1]} : vector<8x128xf32> to vector<8x32xf32>
    %151 = vector.extract_strided_slice %148 {offsets = [0, 64], sizes = [8, 32], strides = [1, 1]} : vector<8x128xf32> to vector<8x32xf32>
    %152 = vector.extract_strided_slice %148 {offsets = [0, 96], sizes = [8, 32], strides = [1, 1]} : vector<8x128xf32> to vector<8x32xf32>
    %153 = arith.truncf %143 : vector<8x32xf32> to vector<8x32xbf16>
    %cst_51 = arith.constant dense<0.000000e+00> : vector<8x32xf32>
    %154 = tpu.matmul %153, %3, %cst_51 {dimension_numbers = #tpu.dot_dimension_numbers<[1], [0], [0], [1], [0, 0, 1, 1], [], []>} : vector<8x32xbf16>, vector<32x32xbf16>, vector<8x32xf32> -> vector<8x32xf32>
    %155 = arith.addf %149, %154 : vector<8x32xf32>
    %156 = arith.negf %155 : vector<8x32xf32>
    %157 = math.exp %156 : vector<8x32xf32>
    %cst_52 = arith.constant 1.000000e+00 : f32
    %158 = vector.broadcast %cst_52 : f32 to vector<8x32xf32>
    %159 = arith.addf %158, %157 : vector<8x32xf32>
    %160 = arith.divf %158, %159 : vector<8x32xf32>
    %cst_53 = arith.constant dense<0.000000e+00> : vector<8x32xf32>
    %161 = tpu.matmul %153, %4, %cst_53 {dimension_numbers = #tpu.dot_dimension_numbers<[1], [0], [0], [1], [0, 0, 1, 1], [], []>} : vector<8x32xbf16>, vector<32x32xbf16>, vector<8x32xf32> -> vector<8x32xf32>
    %162 = arith.addf %150, %161 : vector<8x32xf32>
    %163 = arith.negf %162 : vector<8x32xf32>
    %164 = math.exp %163 : vector<8x32xf32>
    %cst_54 = arith.constant 1.000000e+00 : f32
    %165 = vector.broadcast %cst_54 : f32 to vector<8x32xf32>
    %166 = arith.addf %165, %164 : vector<8x32xf32>
    %167 = arith.divf %165, %166 : vector<8x32xf32>
    %168 = arith.mulf %160, %143 : vector<8x32xf32>
    %169 = arith.truncf %168 : vector<8x32xf32> to vector<8x32xbf16>
    %cst_55 = arith.constant dense<0.000000e+00> : vector<8x32xf32>
    %170 = tpu.matmul %169, %5, %cst_55 {dimension_numbers = #tpu.dot_dimension_numbers<[1], [0], [0], [1], [0, 0, 1, 1], [], []>} : vector<8x32xbf16>, vector<32x32xbf16>, vector<8x32xf32> -> vector<8x32xf32>
    %171 = arith.addf %151, %170 : vector<8x32xf32>
    %172 = math.tanh %171 : vector<8x32xf32>
    %173 = arith.mulf %167, %143 : vector<8x32xf32>
    %cst_56 = arith.constant 1.000000e+00 : f32
    %174 = vector.broadcast %cst_56 : f32 to vector<8x32xf32>
    %175 = arith.subf %174, %167 : vector<8x32xf32>
    %176 = arith.mulf %175, %172 : vector<8x32xf32>
    %177 = arith.mulf %176, %152 : vector<8x32xf32>
    %178 = arith.addf %173, %177 : vector<8x32xf32>
    %c0_57 = arith.constant 0 : index
    %c0_58 = arith.constant 0 : index
    %c128 = arith.constant 128 : index
    %179 = vector.load %arg6[%c0_57, %c0_58, %c128] : memref<1x8x256xf32, #tpu.memory_space<vmem>>, vector<1x8x32xf32>
    %180 = vector.shape_cast %179 : vector<1x8x32xf32> to vector<8x32xf32>
    %181 = vector.shape_cast %178 : vector<8x32xf32> to vector<1x8x32xf32>
    tpu.vector_store %arg6[%c0_57, %c0_58, %c128], %181 {strides = array<i32>} : memref<1x8x256xf32, #tpu.memory_space<vmem>>, vector<1x8x32xf32>,
    %c5 = arith.constant 5 : index
    %c0_59 = arith.constant 0 : index
    %c0_60 = arith.constant 0 : index
    %182 = vector.load %arg2[%c5, %c0_59, %c0_60] : memref<8x8x128xf32, #tpu.memory_space<vmem>>, vector<1x8x128xf32>
    %183 = vector.shape_cast %182 : vector<1x8x128xf32> to vector<8x128xf32>
    %184 = vector.extract_strided_slice %183 {offsets = [0, 0], sizes = [8, 32], strides = [1, 1]} : vector<8x128xf32> to vector<8x32xf32>
    %185 = vector.extract_strided_slice %183 {offsets = [0, 32], sizes = [8, 32], strides = [1, 1]} : vector<8x128xf32> to vector<8x32xf32>
    %186 = vector.extract_strided_slice %183 {offsets = [0, 64], sizes = [8, 32], strides = [1, 1]} : vector<8x128xf32> to vector<8x32xf32>
    %187 = vector.extract_strided_slice %183 {offsets = [0, 96], sizes = [8, 32], strides = [1, 1]} : vector<8x128xf32> to vector<8x32xf32>
    %188 = arith.truncf %178 : vector<8x32xf32> to vector<8x32xbf16>
    %cst_61 = arith.constant dense<0.000000e+00> : vector<8x32xf32>
    %189 = tpu.matmul %188, %3, %cst_61 {dimension_numbers = #tpu.dot_dimension_numbers<[1], [0], [0], [1], [0, 0, 1, 1], [], []>} : vector<8x32xbf16>, vector<32x32xbf16>, vector<8x32xf32> -> vector<8x32xf32>
    %190 = arith.addf %184, %189 : vector<8x32xf32>
    %191 = arith.negf %190 : vector<8x32xf32>
    %192 = math.exp %191 : vector<8x32xf32>
    %cst_62 = arith.constant 1.000000e+00 : f32
    %193 = vector.broadcast %cst_62 : f32 to vector<8x32xf32>
    %194 = arith.addf %193, %192 : vector<8x32xf32>
    %195 = arith.divf %193, %194 : vector<8x32xf32>
    %cst_63 = arith.constant dense<0.000000e+00> : vector<8x32xf32>
    %196 = tpu.matmul %188, %4, %cst_63 {dimension_numbers = #tpu.dot_dimension_numbers<[1], [0], [0], [1], [0, 0, 1, 1], [], []>} : vector<8x32xbf16>, vector<32x32xbf16>, vector<8x32xf32> -> vector<8x32xf32>
    %197 = arith.addf %185, %196 : vector<8x32xf32>
    %198 = arith.negf %197 : vector<8x32xf32>
    %199 = math.exp %198 : vector<8x32xf32>
    %cst_64 = arith.constant 1.000000e+00 : f32
    %200 = vector.broadcast %cst_64 : f32 to vector<8x32xf32>
    %201 = arith.addf %200, %199 : vector<8x32xf32>
    %202 = arith.divf %200, %201 : vector<8x32xf32>
    %203 = arith.mulf %195, %178 : vector<8x32xf32>
    %204 = arith.truncf %203 : vector<8x32xf32> to vector<8x32xbf16>
    %cst_65 = arith.constant dense<0.000000e+00> : vector<8x32xf32>
    %205 = tpu.matmul %204, %5, %cst_65 {dimension_numbers = #tpu.dot_dimension_numbers<[1], [0], [0], [1], [0, 0, 1, 1], [], []>} : vector<8x32xbf16>, vector<32x32xbf16>, vector<8x32xf32> -> vector<8x32xf32>
    %206 = arith.addf %186, %205 : vector<8x32xf32>
    %207 = math.tanh %206 : vector<8x32xf32>
    %208 = arith.mulf %202, %178 : vector<8x32xf32>
    %cst_66 = arith.constant 1.000000e+00 : f32
    %209 = vector.broadcast %cst_66 : f32 to vector<8x32xf32>
    %210 = arith.subf %209, %202 : vector<8x32xf32>
    %211 = arith.mulf %210, %207 : vector<8x32xf32>
    %212 = arith.mulf %211, %187 : vector<8x32xf32>
    %213 = arith.addf %208, %212 : vector<8x32xf32>
    %c0_67 = arith.constant 0 : index
    %c0_68 = arith.constant 0 : index
    %c160 = arith.constant 160 : index
    %214 = vector.load %arg6[%c0_67, %c0_68, %c160] : memref<1x8x256xf32, #tpu.memory_space<vmem>>, vector<1x8x32xf32>
    %215 = vector.shape_cast %214 : vector<1x8x32xf32> to vector<8x32xf32>
    %216 = vector.shape_cast %213 : vector<8x32xf32> to vector<1x8x32xf32>
    tpu.vector_store %arg6[%c0_67, %c0_68, %c160], %216 {strides = array<i32>} : memref<1x8x256xf32, #tpu.memory_space<vmem>>, vector<1x8x32xf32>,
    %c6 = arith.constant 6 : index
    %c0_69 = arith.constant 0 : index
    %c0_70 = arith.constant 0 : index
    %217 = vector.load %arg2[%c6, %c0_69, %c0_70] : memref<8x8x128xf32, #tpu.memory_space<vmem>>, vector<1x8x128xf32>
    %218 = vector.shape_cast %217 : vector<1x8x128xf32> to vector<8x128xf32>
    %219 = vector.extract_strided_slice %218 {offsets = [0, 0], sizes = [8, 32], strides = [1, 1]} : vector<8x128xf32> to vector<8x32xf32>
    %220 = vector.extract_strided_slice %218 {offsets = [0, 32], sizes = [8, 32], strides = [1, 1]} : vector<8x128xf32> to vector<8x32xf32>
    %221 = vector.extract_strided_slice %218 {offsets = [0, 64], sizes = [8, 32], strides = [1, 1]} : vector<8x128xf32> to vector<8x32xf32>
    %222 = vector.extract_strided_slice %218 {offsets = [0, 96], sizes = [8, 32], strides = [1, 1]} : vector<8x128xf32> to vector<8x32xf32>
    %223 = arith.truncf %213 : vector<8x32xf32> to vector<8x32xbf16>
    %cst_71 = arith.constant dense<0.000000e+00> : vector<8x32xf32>
    %224 = tpu.matmul %223, %3, %cst_71 {dimension_numbers = #tpu.dot_dimension_numbers<[1], [0], [0], [1], [0, 0, 1, 1], [], []>} : vector<8x32xbf16>, vector<32x32xbf16>, vector<8x32xf32> -> vector<8x32xf32>
    %225 = arith.addf %219, %224 : vector<8x32xf32>
    %226 = arith.negf %225 : vector<8x32xf32>
    %227 = math.exp %226 : vector<8x32xf32>
    %cst_72 = arith.constant 1.000000e+00 : f32
    %228 = vector.broadcast %cst_72 : f32 to vector<8x32xf32>
    %229 = arith.addf %228, %227 : vector<8x32xf32>
    %230 = arith.divf %228, %229 : vector<8x32xf32>
    %cst_73 = arith.constant dense<0.000000e+00> : vector<8x32xf32>
    %231 = tpu.matmul %223, %4, %cst_73 {dimension_numbers = #tpu.dot_dimension_numbers<[1], [0], [0], [1], [0, 0, 1, 1], [], []>} : vector<8x32xbf16>, vector<32x32xbf16>, vector<8x32xf32> -> vector<8x32xf32>
    %232 = arith.addf %220, %231 : vector<8x32xf32>
    %233 = arith.negf %232 : vector<8x32xf32>
    %234 = math.exp %233 : vector<8x32xf32>
    %cst_74 = arith.constant 1.000000e+00 : f32
    %235 = vector.broadcast %cst_74 : f32 to vector<8x32xf32>
    %236 = arith.addf %235, %234 : vector<8x32xf32>
    %237 = arith.divf %235, %236 : vector<8x32xf32>
    %238 = arith.mulf %230, %213 : vector<8x32xf32>
    %239 = arith.truncf %238 : vector<8x32xf32> to vector<8x32xbf16>
    %cst_75 = arith.constant dense<0.000000e+00> : vector<8x32xf32>
    %240 = tpu.matmul %239, %5, %cst_75 {dimension_numbers = #tpu.dot_dimension_numbers<[1], [0], [0], [1], [0, 0, 1, 1], [], []>} : vector<8x32xbf16>, vector<32x32xbf16>, vector<8x32xf32> -> vector<8x32xf32>
    %241 = arith.addf %221, %240 : vector<8x32xf32>
    %242 = math.tanh %241 : vector<8x32xf32>
    %243 = arith.mulf %237, %213 : vector<8x32xf32>
    %cst_76 = arith.constant 1.000000e+00 : f32
    %244 = vector.broadcast %cst_76 : f32 to vector<8x32xf32>
    %245 = arith.subf %244, %237 : vector<8x32xf32>
    %246 = arith.mulf %245, %242 : vector<8x32xf32>
    %247 = arith.mulf %246, %222 : vector<8x32xf32>
    %248 = arith.addf %243, %247 : vector<8x32xf32>
    %c0_77 = arith.constant 0 : index
    %c0_78 = arith.constant 0 : index
    %c192 = arith.constant 192 : index
    %249 = vector.load %arg6[%c0_77, %c0_78, %c192] : memref<1x8x256xf32, #tpu.memory_space<vmem>>, vector<1x8x32xf32>
    %250 = vector.shape_cast %249 : vector<1x8x32xf32> to vector<8x32xf32>
    %251 = vector.shape_cast %248 : vector<8x32xf32> to vector<1x8x32xf32>
    tpu.vector_store %arg6[%c0_77, %c0_78, %c192], %251 {strides = array<i32>} : memref<1x8x256xf32, #tpu.memory_space<vmem>>, vector<1x8x32xf32>,
    %c7 = arith.constant 7 : index
    %c0_79 = arith.constant 0 : index
    %c0_80 = arith.constant 0 : index
    %252 = vector.load %arg2[%c7, %c0_79, %c0_80] : memref<8x8x128xf32, #tpu.memory_space<vmem>>, vector<1x8x128xf32>
    %253 = vector.shape_cast %252 : vector<1x8x128xf32> to vector<8x128xf32>
    %254 = vector.extract_strided_slice %253 {offsets = [0, 0], sizes = [8, 32], strides = [1, 1]} : vector<8x128xf32> to vector<8x32xf32>
    %255 = vector.extract_strided_slice %253 {offsets = [0, 32], sizes = [8, 32], strides = [1, 1]} : vector<8x128xf32> to vector<8x32xf32>
    %256 = vector.extract_strided_slice %253 {offsets = [0, 64], sizes = [8, 32], strides = [1, 1]} : vector<8x128xf32> to vector<8x32xf32>
    %257 = vector.extract_strided_slice %253 {offsets = [0, 96], sizes = [8, 32], strides = [1, 1]} : vector<8x128xf32> to vector<8x32xf32>
    %258 = arith.truncf %248 : vector<8x32xf32> to vector<8x32xbf16>
    %cst_81 = arith.constant dense<0.000000e+00> : vector<8x32xf32>
    %259 = tpu.matmul %258, %3, %cst_81 {dimension_numbers = #tpu.dot_dimension_numbers<[1], [0], [0], [1], [0, 0, 1, 1], [], []>} : vector<8x32xbf16>, vector<32x32xbf16>, vector<8x32xf32> -> vector<8x32xf32>
    %260 = arith.addf %254, %259 : vector<8x32xf32>
    %261 = arith.negf %260 : vector<8x32xf32>
    %262 = math.exp %261 : vector<8x32xf32>
    %cst_82 = arith.constant 1.000000e+00 : f32
    %263 = vector.broadcast %cst_82 : f32 to vector<8x32xf32>
    %264 = arith.addf %263, %262 : vector<8x32xf32>
    %265 = arith.divf %263, %264 : vector<8x32xf32>
    %cst_83 = arith.constant dense<0.000000e+00> : vector<8x32xf32>
    %266 = tpu.matmul %258, %4, %cst_83 {dimension_numbers = #tpu.dot_dimension_numbers<[1], [0], [0], [1], [0, 0, 1, 1], [], []>} : vector<8x32xbf16>, vector<32x32xbf16>, vector<8x32xf32> -> vector<8x32xf32>
    %267 = arith.addf %255, %266 : vector<8x32xf32>
    %268 = arith.negf %267 : vector<8x32xf32>
    %269 = math.exp %268 : vector<8x32xf32>
    %cst_84 = arith.constant 1.000000e+00 : f32
    %270 = vector.broadcast %cst_84 : f32 to vector<8x32xf32>
    %271 = arith.addf %270, %269 : vector<8x32xf32>
    %272 = arith.divf %270, %271 : vector<8x32xf32>
    %273 = arith.mulf %265, %248 : vector<8x32xf32>
    %274 = arith.truncf %273 : vector<8x32xf32> to vector<8x32xbf16>
    %cst_85 = arith.constant dense<0.000000e+00> : vector<8x32xf32>
    %275 = tpu.matmul %274, %5, %cst_85 {dimension_numbers = #tpu.dot_dimension_numbers<[1], [0], [0], [1], [0, 0, 1, 1], [], []>} : vector<8x32xbf16>, vector<32x32xbf16>, vector<8x32xf32> -> vector<8x32xf32>
    %276 = arith.addf %256, %275 : vector<8x32xf32>
    %277 = math.tanh %276 : vector<8x32xf32>
    %278 = arith.mulf %272, %248 : vector<8x32xf32>
    %cst_86 = arith.constant 1.000000e+00 : f32
    %279 = vector.broadcast %cst_86 : f32 to vector<8x32xf32>
    %280 = arith.subf %279, %272 : vector<8x32xf32>
    %281 = arith.mulf %280, %277 : vector<8x32xf32>
    %282 = arith.mulf %281, %257 : vector<8x32xf32>
    %283 = arith.addf %278, %282 : vector<8x32xf32>
    %c0_87 = arith.constant 0 : index
    %c0_88 = arith.constant 0 : index
    %c224 = arith.constant 224 : index
    %284 = vector.load %arg6[%c0_87, %c0_88, %c224] : memref<1x8x256xf32, #tpu.memory_space<vmem>>, vector<1x8x32xf32>
    %285 = vector.shape_cast %284 : vector<1x8x32xf32> to vector<8x32xf32>
    %286 = vector.shape_cast %283 : vector<8x32xf32> to vector<1x8x32xf32>
    tpu.vector_store %arg6[%c0_87, %c0_88, %c224], %286 {strides = array<i32>} : memref<1x8x256xf32, #tpu.memory_space<vmem>>, vector<1x8x32xf32>,
    %c0_89 = arith.constant 0 : index
    %c0_90 = arith.constant 0 : index
    %287 = vector.load %arg7[%c0_89, %c0_90] : memref<8x32xf32, #tpu.memory_space<vmem>>, vector<8x32xf32>
    tpu.vector_store %arg7[%c0_89, %c0_90], %283 {strides = array<i32>} : memref<8x32xf32, #tpu.memory_space<vmem>>, vector<8x32xf32>,
    return
  }
  func.func @transform_0(%arg0: i32, %arg1: i32) -> (i32, i32, i32) {
    %c0_i32 = arith.constant 0 : i32
    %c0_i32_0 = arith.constant 0 : i32
    return %arg1, %arg0, %c0_i32 : i32, i32, i32
  }
  func.func @transform_1(%arg0: i32, %arg1: i32) -> (i32, i32) {
    %c0_i32 = arith.constant 0 : i32
    %c0_i32_0 = arith.constant 0 : i32
    %c0_i32_1 = arith.constant 0 : i32
    return %c0_i32, %c0_i32_0 : i32, i32
  }
  func.func @transform_2(%arg0: i32, %arg1: i32) -> (i32, i32) {
    %c0_i32 = arith.constant 0 : i32
    %c0_i32_0 = arith.constant 0 : i32
    %c0_i32_1 = arith.constant 0 : i32
    return %c0_i32, %c0_i32_0 : i32, i32
  }
  func.func @transform_3(%arg0: i32, %arg1: i32) -> (i32, i32) {
    %c0_i32 = arith.constant 0 : i32
    %c0_i32_0 = arith.constant 0 : i32
    %c0_i32_1 = arith.constant 0 : i32
    return %c0_i32, %c0_i32_0 : i32, i32
  }
  func.func @transform_4(%arg0: i32, %arg1: i32) -> (i32, i32, i32) {
    %c0_i32 = arith.constant 0 : i32
    %c0_i32_0 = arith.constant 0 : i32
    return %arg1, %arg0, %c0_i32 : i32, i32, i32
  }
}

</mosaic_0001>

<bundles_post_ra>
// kernel: gru_heur_long_pro.1
= control target key start
LH: loop header
LB: loop body
LE: loop exit
PB: predicated region body
PF: predicated region fallthrough
CT: control target
= control target key end

     0   :  { %vm22_vm0 = vcmask 261120   ;;  %v1910_v0 = vmov 0.0   ;;  %vm1911_vm1 = vmmov 0   ;;  %s1912_s26 = smov 64   ;;  %s1913_s27 = smov 32   ;;  %vm421_vm2 = vcmask 523520   ;;  %s2293_s1 = inlined_call_operand.vmem [shape: bf16[32,32], index: 1, kind: input, shape index: {}]   ;;  %s2294_s3 = inlined_call_operand.vmem [shape: bf16[32,32], index: 3, kind: input, shape index: {}]   ;;  %s2295_s2 = inlined_call_operand.vmem [shape: bf16[32,32], index: 2, kind: input, shape index: {}]   ;;  %s2296_s0 = inlined_call_operand.vmem [shape: f32[8,8,128], index: 0, kind: input, shape index: {}]   ;;  %s2297_s4 = inlined_call_operand.vmem [shape: f32[1,8,256], index: 4, kind: output, shape index: {}]  }
   0x1   :  { %1627 = vmatprep.subr.bf16.mxu0 %v1910_v0  ;;  %v1944_v1 = vld [vmem:[%s2293_s1] sm:$0xff]   ;;  %1631 = vmatprep.mubr.msk.bf16.mxu0 %vm1911_vm1, %v1910_v0  ;;  %23 = vst.msk [vmem:[#allocation2] sm:$0xff] %vm22_vm0, %v1910_v0  ;;  %v1957_v2 = vld [vmem:[%s2293_s1 + $0x8] sm:$0xff]   ;;  %s1914_s28 = smov 96   ;;  %vm602_vm3 = vcmask 785920   ;;  %vm782_vm4 = vcmask 1048320  }
   0x2   :  { %1635 = vmatprep.subr.bf16.mxu1 %v1910_v0  ;;  %1639 = vmatprep.mubr.msk.bf16.mxu1 %vm1911_vm1, %v1910_v0  ;;  %v1972_v5 = vld [vmem:[%s2294_s3] sm:$0xff]   ;;  %v1978_v6 = vld [vmem:[%s2294_s3 + $0x8] sm:$0xff]  }
   0x3   :  { %1628 = vmatpush3.bf16.msra.mxu0 %v1944_v1  ;;  %v1986_v7 = vld [vmem:[%s2295_s2] sm:$0xff]   ;;  %v1992_v8 = vld [vmem:[%s2295_s2 + $0x8] sm:$0xff]  }
   0x4   :  { %1629 = vmatprep.subr.bf16.mxu0 %v1910_v0  ;;  %1636 = vmatpush3.bf16.msra.mxu1 %v1986_v7  ;;  %v37_v9 = vld [vmem:[%s2296_s0] sm:$0xff]  ;;  %v1513_v49 = vld [vmem:[%s2296_s0 + $0x8] sm:$0xff] }
   0x5   :  { %1637 = vmatprep.subr.bf16.mxu1 %v1910_v0 }
   0x7   :  { %1630 = vmatpush3.bf16.msra.mxu0 %v1957_v2 }
   0x8   :  { %v1961_v3 = vld [vmem:[#allocation2] sm:$0xff]  ;;  %1643 = vmatprep.subr.bf16.mxu0 %v1910_v0  ;;  %1638 = vmatpush3.bf16.msra.mxu1 %v1992_v8 }
   0x9   :  { %v38_v4 = vpack.c.bf16 %v1961_v3, %v1961_v3  ;;  %1651 = vmatprep.subr.bf16.mxu1 %v1910_v0 }
   0xb   :  { %1632 = vmatmul.mubr.msk.bf16.vlgmr.msra.gmra.mrb[0].mxu0 %vm22_vm0, %v38_v4  ;;  %1640 = vmatmul.mubr.msk.bf16.vlgmr.msra.gmra.mrb[0].mxu1 %vm22_vm0, %v38_v4 }
   0xc   :  { %1647 = vmatprep.mubr.msk.bf16.mxu0 %vm1911_vm1, %v1910_v0  ;;  %1644 = vmatpush3.bf16.msra.mxu0 %v1972_v5 }
   0xd   :  { %1645 = vmatprep.subr.bf16.mxu0 %v1910_v0  ;;  %1652 = vmatpush3.bf16.msra.mxu1 %v1944_v1 }
   0xe   :  { %1655 = vmatprep.mubr.msk.bf16.mxu1 %vm1911_vm1, %v1910_v0  ;;  %1653 = vmatprep.subr.bf16.mxu1 %v1910_v0 }
  0x10   :  { %1646 = vmatpush3.bf16.msra.mxu0 %v1978_v6 }
  0x11   :  { %1659 = vmatprep.subr.bf16.mxu0 %v1910_v0  ;;  %1654 = vmatpush3.bf16.msra.mxu1 %v1957_v2 }
  0x12   :  { %1667 = vmatprep.subr.bf16.mxu1 %v1910_v0 }
  0xde   :  { %v89_v10 = vpop.f32.mrb[0].mxu0  ;;  %v148_v21 = vpop.f32.mrb[0].mxu1 }
  0xdf   :  { %v95_v11 = vadd.f32 %v89_v10, %v37_v9  ;;  %v1633_v12 = vpop.f32.mrb[1].mxu0  ;;  %v1641_v22 = vpop.f32.mrb[1].mxu1 }
  0xe0   :  { %v92_v13 = vpop.f32.mrb[2].mxu0  ;;  %v151_v23 = vpop.f32.mrb[2].mxu1 }
  0xe1   :  { %v1505_v14 = vmul.f32 -1.442695, %v95_v11  ;;  %v1634_v15 = vpop.f32.mrb[3].mxu0  ;;  %v1642_v24 = vpop.f32.mrb[3].mxu1 }
  0xe3   :  { %1830 = vpow2.f32 %v1505_v14 }
  0xed   :  { %v1831_v16 = vpop.eup %1830 }
  0xee   :  { %v99_v17 = vadd.f32 1.0, %v1831_v16 }
  0xf0   :  { %1832 = vrcp.f32 %v99_v17 }
  0xfa   :  { %v1833_v18 = vpop.eup %1832 }
  0xfb   :  { %v165_v19 = vmul.f32 %v1833_v18, %v1961_v3 }
  0xfd   :  { %v166_v20 = vpack.c.bf16 %v165_v19, %v165_v19 }
  0xff   :  { %1648 = vmatmul.mubr.msk.bf16.vlgmr.msra.gmra.mrb[4].mxu0 %vm22_vm0, %v166_v20 }
 0x100   :  { %1660 = vmatpush3.bf16.msra.mxu0 %v1986_v7  ;;  %1663 = vmatprep.mubr.msk.bf16.mxu0 %vm1911_vm1, %v1910_v0 }
 0x101   :  { %1661 = vmatprep.subr.bf16.mxu0 %v1910_v0 }
 0x104   :  { %1662 = vmatpush3.bf16.msra.mxu0 %v1992_v8 }
 0x105   :  { %1675 = vmatprep.subr.bf16.mxu0 %v1910_v0 }
 0x1d2   :  { %v216_v25 = vpop.f32.mrb[4].mxu0 }
 0x1d3   :  { %223 = vrot.lane.b32.xlu0 %v216_v25, %s1912_s26  ;;  %v1649_v26 = vpop.f32.mrb[5].mxu0 }
 0x1d4   :  { %v219_v27 = vpop.f32.mrb[6].mxu0 }
 0x1d5   :  { %v1650_v28 = vpop.f32.mrb[7].mxu0 }
 0x1d7   :  { %155 = vrot.lane.b32.xlu0 %v148_v21, %s1913_s27 }
 0x1db   :  { %240 = vrot.lane.b32.xlu0 %v37_v9, %s1912_s26 }
 0x245   :  { %v224_v29 = vpop.permute.xlu0 %223 }
 0x246   :  { %v226_v30 = vadd.f32 %v224_v29, %v37_v9 }
 0x248   :  { %1834 = vtanh.f32 %v226_v30  ;;  %v1519_v30 = vld [vmem:[%s2296_s0 + $0x10] sm:$0xff] }
 0x249   :  { %v156_v32 = vpop.permute.xlu0 %155 }
 0x24a   :  { %v158_v33 = vadd.f32 %v156_v32, %v37_v9 }
 0x24c   :  { %v1509_v34 = vmul.f32 -1.442695, %v158_v33 }
 0x24d   :  { %v241_v41 = vpop.permute.xlu0 %240 }
 0x24e   :  { %1836 = vpow2.f32 %v1509_v34 }
 0x252   :  { %v1835_v31 = vpop.eup %1834 }
 0x253   :  { %235 = vrot.lane.b32.xlu1 %v1835_v31, %s1914_s28 }
 0x257   :  { %229 = vrot.lane.b32.xlu1 %v1961_v3, %s1913_s27 }
 0x258   :  { %v1837_v35 = vpop.eup %1836 }
 0x259   :  { %v162_v36 = vadd.f32 1.0, %v1837_v35 }
 0x25b   :  { %1838 = vrcp.f32 %v162_v36 }
 0x265   :  { %v1839_v37 = vpop.eup %1838 }
 0x266   :  { %v233_v38 = vsub.f32 1.0, %v1839_v37 }
 0x2c5   :  { %v236_v39 = vpop.permute.xlu1 %235 }
 0x2c6   :  { %v238_v40 = vmul.f32 %v236_v39, %v233_v38 }
 0x2c8   :  { %v243_v43 = vmul.f32 %v241_v41, %v238_v40 }
 0x2c9   :  { %v230_v42 = vpop.permute.xlu1 %229 }
 0x2ca   :  { %v232_v44 = vmul.f32 %v1839_v37, %v230_v42 }
 0x2cc   :  { %v2021_v45 = vadd.f32 %v243_v43, %v232_v44 }
 0x2ce   :  { %246 = vrot.lane.b32.xlu0 %v2021_v45, %s1914_s28  ;;  %v252_v46 = vpack.c.bf16 %v2021_v45, %v2021_v45 }
 0x2d0   :  { %254 = vrot.lane.b32.xlu1 %v252_v46, %s1914_s28 }
 0x340   :  { %v247_v47 = vpop.permute.xlu0 %246 }
 0x341   :  { %249 = vst.msk [vmem:[%s2297_s4] sm:$0xff] %vm22_vm0, %v247_v47 }
 0x342   :  { %v255_v48 = vpop.permute.xlu1 %254 }
 0x343   :  { %1656 = vmatmul.mubr.msk.bf16.vlgmr.msra.gmra.mrb[4].mxu1 %vm22_vm0, %v255_v48  ;;  %1664 = vmatmul.mubr.msk.bf16.vlgmr.msra.gmra.mrb[8].mxu0 %vm22_vm0, %v255_v48 }
 0x344   :  { %1668 = vmatpush3.bf16.msra.mxu1 %v1972_v5  ;;  %1671 = vmatprep.mubr.msk.bf16.mxu1 %vm1911_vm1, %v1910_v0 }
 0x345   :  { %1669 = vmatprep.subr.bf16.mxu1 %v1910_v0  ;;  %1676 = vmatpush3.bf16.msra.mxu0 %v1944_v1 }
 0x346   :  { %1677 = vmatprep.subr.bf16.mxu0 %v1910_v0  ;;  %1679 = vmatprep.mubr.msk.bf16.mxu0 %vm1911_vm1, %v1910_v0 }
 0x348   :  { %1670 = vmatpush3.bf16.msra.mxu1 %v1978_v6 }
 0x349   :  { %1683 = vmatprep.subr.bf16.mxu1 %v1910_v0  ;;  %1678 = vmatpush3.bf16.msra.mxu0 %v1957_v2 }
 0x34a   :  { %1691 = vmatprep.subr.bf16.mxu0 %v1910_v0 }
 0x416   :  { %v293_v50 = vpop.f32.mrb[4].mxu1  ;;  %v340_v51 = vpop.f32.mrb[8].mxu0 }
 0x417   :  { %v299_v52 = vadd.f32 %v1513_v49, %v293_v50  ;;  %v1657_v53 = vpop.f32.mrb[5].mxu1  ;;  %347 = vrot.lane.b32.xlu0 %v340_v51, %s1913_s27  ;;  %v1665_v54 = vpop.f32.mrb[9].mxu0 }
 0x418   :  { %v296_v55 = vpop.f32.mrb[6].mxu1  ;;  %v343_v56 = vpop.f32.mrb[10].mxu0 }
 0x419   :  { %v1515_v57 = vmul.f32 -1.442695, %v299_v52  ;;  %v1658_v58 = vpop.f32.mrb[7].mxu1  ;;  %v1666_v59 = vpop.f32.mrb[11].mxu0 }
 0x41b   :  { %1840 = vpow2.f32 %v1515_v57  ;;  %416 = vrot.lane.b32.xlu0 %v1513_v49, %s1912_s26 }
 0x425   :  { %v1841_v60 = vpop.eup %1840 }
 0x426   :  { %v303_v61 = vadd.f32 1.0, %v1841_v60 }
 0x428   :  { %1842 = vrcp.f32 %v303_v61 }
 0x432   :  { %v1843_v62 = vpop.eup %1842 }
 0x433   :  { %v357_v63 = vmul.f32 %v1843_v62, %v247_v47 }
 0x435   :  { %v358_v3 = vpack.c.bf16 %v357_v63, %v357_v63 }
 0x437   :  { %1672 = vmatmul.mubr.msk.bf16.vlgmr.msra.gmra.mrb[8].mxu1 %vm22_vm0, %v358_v3 }
 0x438   :  { %1684 = vmatpush3.bf16.msra.mxu1 %v1986_v7  ;;  %1687 = vmatprep.mubr.msk.bf16.mxu1 %vm1911_vm1, %v1910_v0 }
 0x439   :  { %1685 = vmatprep.subr.bf16.mxu1 %v1910_v0 }
 0x43c   :  { %1686 = vmatpush3.bf16.msra.mxu1 %v1992_v8 }
 0x43d   :  { %1699 = vmatprep.subr.bf16.mxu1 %v1910_v0 }
 0x489   :  { %v348_v15 = vpop.permute.xlu0 %347 }
 0x48a   :  { %v350_v16 = vadd.f32 %v1513_v49, %v348_v15 }
 0x48c   :  { %v1517_v17 = vmul.f32 -1.442695, %v350_v16 }
 0x48d   :  { %v417_v23 = vpop.permute.xlu0 %416 }
 0x50a   :  { %v396_v4 = vpop.f32.mrb[8].mxu1 }
 0x50b   :  { %403 = vrot.lane.b32.xlu1 %v396_v4, %s1912_s26  ;;  %v1673_v9 = vpop.f32.mrb[9].mxu1 }
 0x50c   :  { %v399_v10 = vpop.f32.mrb[10].mxu1 }
 0x50d   :  { %v1674_v11 = vpop.f32.mrb[11].mxu1 }
 0x57d   :  { %v404_v12 = vpop.permute.xlu1 %403 }
 0x57e   :  { %v406_v13 = vadd.f32 %v1513_v49, %v404_v12  ;;  %v1525_v12 = vld [vmem:[%s2296_s0 + $0x18] sm:$0xff] }
 0x580   :  { %1844 = vtanh.f32 %v406_v13 }
 0x581   :  { %1846 = vpow2.f32 %v1517_v17 }
 0x58a   :  { %v1845_v14 = vpop.eup %1844 }
 0x58b   :  { %411 = vrot.lane.b32.xlu1 %v1845_v14, %s1914_s28  ;;  %v1847_v18 = vpop.eup %1846 }
 0x58c   :  { %v354_v19 = vadd.f32 1.0, %v1847_v18 }
 0x58e   :  { %1848 = vrcp.f32 %v354_v19 }
 0x598   :  { %v1849_v20 = vpop.eup %1848 }
 0x599   :  { %v409_v21 = vsub.f32 1.0, %v1849_v20  ;;  %v408_v25 = vmul.f32 %v1849_v20, %v2021_v45 }
 0x5fd   :  { %v412_v22 = vpop.permute.xlu1 %411 }
 0x5fe   :  { %v414_v24 = vmul.f32 %v412_v22, %v409_v21 }
 0x600   :  { %v419_v26 = vmul.f32 %v417_v23, %v414_v24 }
 0x602   :  { %v2061_v27 = vadd.f32 %v419_v26, %v408_v25 }
 0x604   :  { %531 = vrot.lane.b32.xlu0 %v2061_v27, %s1914_s28  ;;  %v425_v28 = vpack.c.bf16 %v2061_v27, %v2061_v27  ;;  %422 = vst.msk [vmem:[%s2297_s4] sm:$0xff] %vm421_vm2, %v2061_v27 }
 0x606   :  { %427 = vrot.lane.b32.xlu1 %v425_v28, %s1914_s28 }
 0x676   :  { %v532_v44 = vpop.permute.xlu0 %531 }
 0x678   :  { %v428_v29 = vpop.permute.xlu1 %427 }
 0x679   :  { %1680 = vmatmul.mubr.msk.bf16.vlgmr.msra.gmra.mrb[12].mxu0 %vm22_vm0, %v428_v29  ;;  %1688 = vmatmul.mubr.msk.bf16.vlgmr.msra.gmra.mrb[12].mxu1 %vm22_vm0, %v428_v29 }
 0x67a   :  { %1692 = vmatpush3.bf16.msra.mxu0 %v1972_v5  ;;  %1695 = vmatprep.mubr.msk.bf16.mxu0 %vm1911_vm1, %v1910_v0 }
 0x67b   :  { %1693 = vmatprep.subr.bf16.mxu0 %v1910_v0  ;;  %1700 = vmatpush3.bf16.msra.mxu1 %v1944_v1 }
 0x67c   :  { %1701 = vmatprep.subr.bf16.mxu1 %v1910_v0  ;;  %1703 = vmatprep.mubr.msk.bf16.mxu1 %vm1911_vm1, %v1910_v0 }
 0x67e   :  { %1694 = vmatpush3.bf16.msra.mxu0 %v1978_v6 }
 0x67f   :  { %1707 = vmatprep.subr.bf16.mxu0 %v1910_v0  ;;  %1702 = vmatpush3.bf16.msra.mxu1 %v1957_v2 }
 0x680   :  { %1715 = vmatprep.subr.bf16.mxu1 %v1910_v0 }
 0x74c   :  { %v466_v31 = vpop.f32.mrb[12].mxu0  ;;  %v513_v32 = vpop.f32.mrb[12].mxu1 }
 0x74d   :  { %v472_v33 = vadd.f32 %v1519_v30, %v466_v31  ;;  %520 = vrot.lane.b32.xlu0 %v513_v32, %s1913_s27  ;;  %v1681_v34 = vpop.f32.mrb[13].mxu0  ;;  %v1689_v35 = vpop.f32.mrb[13].mxu1 }
 0x74e   :  { %v469_v36 = vpop.f32.mrb[14].mxu0  ;;  %v516_v37 = vpop.f32.mrb[14].mxu1 }
 0x74f   :  { %v1521_v38 = vmul.f32 -1.442695, %v472_v33  ;;  %v1682_v39 = vpop.f32.mrb[15].mxu0  ;;  %v1690_v40 = vpop.f32.mrb[15].mxu1 }
 0x751   :  { %1850 = vpow2.f32 %v1521_v38  ;;  %593 = vrot.lane.b32.xlu0 %v1519_v30, %s1912_s26 }
 0x75b   :  { %v1851_v41 = vpop.eup %1850 }
 0x75c   :  { %v476_v42 = vadd.f32 1.0, %v1851_v41 }
 0x75e   :  { %1852 = vrcp.f32 %v476_v42 }
 0x768   :  { %v1853_v43 = vpop.eup %1852 }
 0x769   :  { %v534_v45 = vmul.f32 %v1853_v43, %v532_v44 }
 0x76b   :  { %v535_v46 = vpack.c.bf16 %v534_v45, %v534_v45 }
 0x76d   :  { %1696 = vmatmul.mubr.msk.bf16.vlgmr.msra.gmra.mrb[16].mxu0 %vm22_vm0, %v535_v46 }
 0x76e   :  { %1708 = vmatpush3.bf16.msra.mxu0 %v1986_v7  ;;  %1711 = vmatprep.mubr.msk.bf16.mxu0 %vm1911_vm1, %v1910_v0 }
 0x76f   :  { %1709 = vmatprep.subr.bf16.mxu0 %v1910_v0 }
 0x772   :  { %1710 = vmatpush3.bf16.msra.mxu0 %v1992_v8 }
 0x773   :  { %1723 = vmatprep.subr.bf16.mxu0 %v1910_v0 }
 0x7bf   :  { %v521_v54 = vpop.permute.xlu0 %520 }
 0x7c0   :  { %v523_v55 = vadd.f32 %v1519_v30, %v521_v54 }
 0x7c2   :  { %v1523_v56 = vmul.f32 -1.442695, %v523_v55 }
 0x7c3   :  { %v594_v62 = vpop.permute.xlu0 %593 }
 0x840   :  { %v573_v47 = vpop.f32.mrb[16].mxu0 }
 0x841   :  { %580 = vrot.lane.b32.xlu1 %v573_v47, %s1912_s26  ;;  %v1697_v48 = vpop.f32.mrb[17].mxu0 }
 0x842   :  { %v576_v49 = vpop.f32.mrb[18].mxu0 }
 0x843   :  { %v1698_v50 = vpop.f32.mrb[19].mxu0 }
 0x8b3   :  { %v581_v51 = vpop.permute.xlu1 %580 }
 0x8b4   :  { %v583_v52 = vadd.f32 %v1519_v30, %v581_v51  ;;  %v1531_v51 = vld [vmem:[%s2296_s0 + $0x20] sm:$0xff] }
 0x8b6   :  { %1854 = vtanh.f32 %v583_v52 }
 0x8b7   :  { %1856 = vpow2.f32 %v1523_v56 }
 0x8c0   :  { %v1855_v53 = vpop.eup %1854 }
 0x8c1   :  { %588 = vrot.lane.b32.xlu1 %v1855_v53, %s1914_s28  ;;  %v1857_v57 = vpop.eup %1856 }
 0x8c2   :  { %v527_v58 = vadd.f32 1.0, %v1857_v57 }
 0x8c4   :  { %1858 = vrcp.f32 %v527_v58 }
 0x8ce   :  { %v1859_v59 = vpop.eup %1858 }
 0x8cf   :  { %v586_v60 = vsub.f32 1.0, %v1859_v59  ;;  %v585_v3 = vmul.f32 %v1859_v59, %v2061_v27 }
 0x933   :  { %v589_v61 = vpop.permute.xlu1 %588 }
 0x934   :  { %v591_v63 = vmul.f32 %v589_v61, %v586_v60 }
 0x936   :  { %v596_v4 = vmul.f32 %v594_v62, %v591_v63 }
 0x938   :  { %v2102_v9 = vadd.f32 %v596_v4, %v585_v3 }
 0x93a   :  { %711 = vrot.lane.b32.xlu0 %v2102_v9, %s1914_s28  ;;  %v606_v10 = vpack.c.bf16 %v2102_v9, %v2102_v9 }
 0x93c   :  { %608 = vrot.lane.b32.xlu1 %v606_v10, %s1914_s28 }
 0x9ac   :  { %v712_v26 = vpop.permute.xlu0 %711 }
 0x9ae   :  { %v609_v11 = vpop.permute.xlu1 %608 }
 0x9af   :  { %1704 = vmatmul.mubr.msk.bf16.vlgmr.msra.gmra.mrb[16].mxu1 %vm22_vm0, %v609_v11  ;;  %1712 = vmatmul.mubr.msk.bf16.vlgmr.msra.gmra.mrb[20].mxu0 %vm22_vm0, %v609_v11 }
 0x9b0   :  { %1716 = vmatpush3.bf16.msra.mxu1 %v1972_v5  ;;  %1719 = vmatprep.mubr.msk.bf16.mxu1 %vm1911_vm1, %v1910_v0 }
 0x9b1   :  { %1717 = vmatprep.subr.bf16.mxu1 %v1910_v0  ;;  %1724 = vmatpush3.bf16.msra.mxu0 %v1944_v1 }
 0x9b2   :  { %1725 = vmatprep.subr.bf16.mxu0 %v1910_v0  ;;  %1727 = vmatprep.mubr.msk.bf16.mxu0 %vm1911_vm1, %v1910_v0 }
 0x9b4   :  { %1718 = vmatpush3.bf16.msra.mxu1 %v1978_v6 }
 0x9b5   :  { %1731 = vmatprep.subr.bf16.mxu1 %v1910_v0  ;;  %1726 = vmatpush3.bf16.msra.mxu0 %v1957_v2 }
 0x9b6   :  { %1739 = vmatprep.subr.bf16.mxu0 %v1910_v0 }
 0xa82   :  { %v647_v13 = vpop.f32.mrb[16].mxu1  ;;  %v694_v14 = vpop.f32.mrb[20].mxu0 }
 0xa83   :  { %v653_v15 = vadd.f32 %v1525_v12, %v647_v13  ;;  %v1705_v16 = vpop.f32.mrb[17].mxu1  ;;  %701 = vrot.lane.b32.xlu0 %v694_v14, %s1913_s27  ;;  %v1713_v17 = vpop.f32.mrb[21].mxu0 }
 0xa84   :  { %v650_v18 = vpop.f32.mrb[18].mxu1  ;;  %v697_v19 = vpop.f32.mrb[22].mxu0 }
 0xa85   :  { %v1527_v20 = vmul.f32 -1.442695, %v653_v15  ;;  %v1706_v21 = vpop.f32.mrb[19].mxu1  ;;  %v1714_v22 = vpop.f32.mrb[23].mxu0 }
 0xa87   :  { %1860 = vpow2.f32 %v1527_v20  ;;  %773 = vrot.lane.b32.xlu0 %v1525_v12, %s1912_s26 }
 0xa91   :  { %v1861_v23 = vpop.eup %1860 }
 0xa92   :  { %v657_v24 = vadd.f32 1.0, %v1861_v23 }
 0xa94   :  { %1862 = vrcp.f32 %v657_v24 }
 0xa9e   :  { %v1863_v25 = vpop.eup %1862 }
 0xa9f   :  { %v714_v27 = vmul.f32 %v1863_v25, %v712_v26 }
 0xaa1   :  { %v715_v28 = vpack.c.bf16 %v714_v27, %v714_v27 }
 0xaa3   :  { %1720 = vmatmul.mubr.msk.bf16.vlgmr.msra.gmra.mrb[20].mxu1 %vm22_vm0, %v715_v28 }
 0xaa4   :  { %1732 = vmatpush3.bf16.msra.mxu1 %v1986_v7  ;;  %1735 = vmatprep.mubr.msk.bf16.mxu1 %vm1911_vm1, %v1910_v0 }
 0xaa5   :  { %1733 = vmatprep.subr.bf16.mxu1 %v1910_v0 }
 0xaa8   :  { %1734 = vmatpush3.bf16.msra.mxu1 %v1992_v8 }
 0xaa9   :  { %1747 = vmatprep.subr.bf16.mxu1 %v1910_v0 }
 0xaf5   :  { %v702_v36 = vpop.permute.xlu0 %701 }
 0xaf6   :  { %v704_v37 = vadd.f32 %v1525_v12, %v702_v36 }
 0xaf8   :  { %v1529_v38 = vmul.f32 -1.442695, %v704_v37 }
 0xaf9   :  { %v774_v44 = vpop.permute.xlu0 %773 }
 0xb76   :  { %v753_v29 = vpop.f32.mrb[20].mxu1 }
 0xb77   :  { %760 = vrot.lane.b32.xlu1 %v753_v29, %s1912_s26  ;;  %v1721_v30 = vpop.f32.mrb[21].mxu1 }
 0xb78   :  { %v756_v31 = vpop.f32.mrb[22].mxu1 }
 0xb79   :  { %v1722_v32 = vpop.f32.mrb[23].mxu1 }
 0xbe9   :  { %v761_v33 = vpop.permute.xlu1 %760 }
 0xbea   :  { %v763_v34 = vadd.f32 %v1525_v12, %v761_v33 }
 0xbec   :  { %1864 = vtanh.f32 %v763_v34 }
 0xbed   :  { %1866 = vpow2.f32 %v1529_v38 }
 0xbf6   :  { %v1865_v35 = vpop.eup %1864 }
 0xbf7   :  { %768 = vrot.lane.b32.xlu1 %v1865_v35, %s1914_s28  ;;  %v1867_v39 = vpop.eup %1866  ;;  %v1537_v35 = vld [vmem:[%s2296_s0 + $0x28] sm:$0xff] }
 0xbf8   :  { %v708_v40 = vadd.f32 1.0, %v1867_v39 }
 0xbfa   :  { %1868 = vrcp.f32 %v708_v40 }
 0xc04   :  { %v1869_v41 = vpop.eup %1868 }
 0xc05   :  { %v766_v42 = vsub.f32 1.0, %v1869_v41  ;;  %v765_v46 = vmul.f32 %v1869_v41, %v2102_v9 }
 0xc69   :  { %v769_v43 = vpop.permute.xlu1 %768 }
 0xc6a   :  { %v771_v45 = vmul.f32 %v769_v43, %v766_v42 }
 0xc6c   :  { %v776_v47 = vmul.f32 %v774_v44, %v771_v45 }
 0xc6e   :  { %v2138_v48 = vadd.f32 %v776_v47, %v765_v46 }
 0xc70   :  { %891 = vrot.lane.b32.xlu0 %v2138_v48, %s1914_s28  ;;  %v786_v49 = vpack.c.bf16 %v2138_v48, %v2138_v48 }
 0xc72   :  { %788 = vrot.lane.b32.xlu1 %v786_v49, %s1914_s28 }
 0xce2   :  { %v892_v4 = vpop.permute.xlu0 %891 }
 0xce4   :  { %v789_v50 = vpop.permute.xlu1 %788 }
 0xce5   :  { %1728 = vmatmul.mubr.msk.bf16.vlgmr.msra.gmra.mrb[24].mxu0 %vm22_vm0, %v789_v50  ;;  %1736 = vmatmul.mubr.msk.bf16.vlgmr.msra.gmra.mrb[24].mxu1 %vm22_vm0, %v789_v50 }
 0xce6   :  { %1740 = vmatpush3.bf16.msra.mxu0 %v1972_v5  ;;  %1743 = vmatprep.mubr.msk.bf16.mxu0 %vm1911_vm1, %v1910_v0 }
 0xce7   :  { %1741 = vmatprep.subr.bf16.mxu0 %v1910_v0  ;;  %1748 = vmatpush3.bf16.msra.mxu1 %v1944_v1 }
 0xce8   :  { %1749 = vmatprep.subr.bf16.mxu1 %v1910_v0  ;;  %1751 = vmatprep.mubr.msk.bf16.mxu1 %vm1911_vm1, %v1910_v0 }
 0xcea   :  { %1742 = vmatpush3.bf16.msra.mxu0 %v1978_v6 }
 0xceb   :  { %1755 = vmatprep.subr.bf16.mxu0 %v1910_v0  ;;  %1750 = vmatpush3.bf16.msra.mxu1 %v1957_v2 }
 0xcec   :  { %1763 = vmatprep.subr.bf16.mxu1 %v1910_v0 }
 0xdb8   :  { %v827_v52 = vpop.f32.mrb[24].mxu0  ;;  %v874_v53 = vpop.f32.mrb[24].mxu1 }
 0xdb9   :  { %v833_v54 = vadd.f32 %v1531_v51, %v827_v52  ;;  %881 = vrot.lane.b32.xlu0 %v874_v53, %s1913_s27  ;;  %v1729_v55 = vpop.f32.mrb[25].mxu0  ;;  %v1737_v56 = vpop.f32.mrb[25].mxu1 }
 0xdba   :  { %v830_v57 = vpop.f32.mrb[26].mxu0  ;;  %v877_v58 = vpop.f32.mrb[26].mxu1 }
 0xdbb   :  { %v1533_v59 = vmul.f32 -1.442695, %v833_v54  ;;  %v1730_v60 = vpop.f32.mrb[27].mxu0  ;;  %v1738_v61 = vpop.f32.mrb[27].mxu1 }
 0xdbd   :  { %1870 = vpow2.f32 %v1533_v59  ;;  %953 = vrot.lane.b32.xlu0 %v1531_v51, %s1912_s26 }
 0xdc7   :  { %v1871_v62 = vpop.eup %1870 }
 0xdc8   :  { %v837_v63 = vadd.f32 1.0, %v1871_v62 }
 0xdca   :  { %1872 = vrcp.f32 %v837_v63 }
 0xdd4   :  { %v1873_v3 = vpop.eup %1872 }
 0xdd5   :  { %v894_v10 = vmul.f32 %v1873_v3, %v892_v4 }
 0xdd7   :  { %v895_v11 = vpack.c.bf16 %v894_v10, %v894_v10 }
 0xdd9   :  { %1744 = vmatmul.mubr.msk.bf16.vlgmr.msra.gmra.mrb[28].mxu0 %vm22_vm0, %v895_v11 }
 0xdda   :  { %1756 = vmatpush3.bf16.msra.mxu0 %v1986_v7  ;;  %1759 = vmatprep.mubr.msk.bf16.mxu0 %vm1911_vm1, %v1910_v0 }
 0xddb   :  { %1757 = vmatprep.subr.bf16.mxu0 %v1910_v0 }
 0xdde   :  { %1758 = vmatpush3.bf16.msra.mxu0 %v1992_v8 }
 0xddf   :  { %1771 = vmatprep.subr.bf16.mxu0 %v1910_v0 }
 0xe2b   :  { %v882_v19 = vpop.permute.xlu0 %881 }
 0xe2c   :  { %v884_v20 = vadd.f32 %v1531_v51, %v882_v19 }
 0xe2e   :  { %v1535_v21 = vmul.f32 -1.442695, %v884_v20 }
 0xe2f   :  { %v954_v27 = vpop.permute.xlu0 %953 }
 0xeac   :  { %v933_v12 = vpop.f32.mrb[28].mxu0 }
 0xead   :  { %940 = vrot.lane.b32.xlu1 %v933_v12, %s1912_s26  ;;  %v1745_v13 = vpop.f32.mrb[29].mxu0 }
 0xeae   :  { %v936_v14 = vpop.f32.mrb[30].mxu0 }
 0xeaf   :  { %v1746_v15 = vpop.f32.mrb[31].mxu0 }
 0xf1f   :  { %v941_v16 = vpop.permute.xlu1 %940 }
 0xf20   :  { %v943_v17 = vadd.f32 %v1531_v51, %v941_v16 }
 0xf22   :  { %1874 = vtanh.f32 %v943_v17 }
 0xf23   :  { %1876 = vpow2.f32 %v1535_v21 }
 0xf2c   :  { %v1875_v18 = vpop.eup %1874 }
 0xf2d   :  { %948 = vrot.lane.b32.xlu1 %v1875_v18, %s1914_s28  ;;  %v1877_v22 = vpop.eup %1876  ;;  %v1543_v18 = vld [vmem:[%s2296_s0 + $0x30] sm:$0xff] }
 0xf2e   :  { %v888_v23 = vadd.f32 1.0, %v1877_v22 }
 0xf30   :  { %1878 = vrcp.f32 %v888_v23 }
 0xf3a   :  { %v1879_v24 = vpop.eup %1878 }
 0xf3b   :  { %v946_v25 = vsub.f32 1.0, %v1879_v24  ;;  %v945_v29 = vmul.f32 %v1879_v24, %v2138_v48 }
 0xf9f   :  { %v949_v26 = vpop.permute.xlu1 %948 }
 0xfa0   :  { %v951_v28 = vmul.f32 %v949_v26, %v946_v25 }
 0xfa2   :  { %v956_v30 = vmul.f32 %v954_v27, %v951_v28 }
 0xfa4   :  { %v2174_v31 = vadd.f32 %v956_v30, %v945_v29 }
 0xfa6   :  { %959 = vrot.lane.b32.xlu0 %v2174_v31, %s1914_s28  ;;  %v965_v32 = vpack.c.bf16 %v2174_v31, %v2174_v31 }
 0xfa8   :  { %967 = vrot.lane.b32.xlu1 %v965_v32, %s1914_s28 }
0x1018   :  { %v960_v33 = vpop.permute.xlu0 %959 }
0x1019   :  { %962 = vst.msk [vmem:[%s2297_s4 + $0x8] sm:$0xff] %vm22_vm0, %v960_v33 }
0x101a   :  { %v968_v34 = vpop.permute.xlu1 %967 }
0x101b   :  { %1752 = vmatmul.mubr.msk.bf16.vlgmr.msra.gmra.mrb[28].mxu1 %vm22_vm0, %v968_v34  ;;  %1760 = vmatmul.mubr.msk.bf16.vlgmr.msra.gmra.mrb[32].mxu0 %vm22_vm0, %v968_v34 }
0x101c   :  { %1764 = vmatpush3.bf16.msra.mxu1 %v1972_v5  ;;  %1767 = vmatprep.mubr.msk.bf16.mxu1 %vm1911_vm1, %v1910_v0 }
0x101d   :  { %1765 = vmatprep.subr.bf16.mxu1 %v1910_v0  ;;  %1772 = vmatpush3.bf16.msra.mxu0 %v1944_v1 }
0x101e   :  { %1773 = vmatprep.subr.bf16.mxu0 %v1910_v0  ;;  %1775 = vmatprep.mubr.msk.bf16.mxu0 %vm1911_vm1, %v1910_v0 }
0x1020   :  { %1766 = vmatpush3.bf16.msra.mxu1 %v1978_v6 }
0x1021   :  { %1779 = vmatprep.subr.bf16.mxu1 %v1910_v0  ;;  %1774 = vmatpush3.bf16.msra.mxu0 %v1957_v2 }
0x1022   :  { %1787 = vmatprep.subr.bf16.mxu0 %v1910_v0 }
0x10ee   :  { %v1006_v36 = vpop.f32.mrb[28].mxu1  ;;  %v1053_v37 = vpop.f32.mrb[32].mxu0 }
0x10ef   :  { %v1012_v38 = vadd.f32 %v1537_v35, %v1006_v36  ;;  %v1753_v39 = vpop.f32.mrb[29].mxu1  ;;  %1060 = vrot.lane.b32.xlu0 %v1053_v37, %s1913_s27  ;;  %v1761_v40 = vpop.f32.mrb[33].mxu0 }
0x10f0   :  { %v1009_v41 = vpop.f32.mrb[30].mxu1  ;;  %v1056_v42 = vpop.f32.mrb[34].mxu0 }
0x10f1   :  { %v1539_v43 = vmul.f32 -1.442695, %v1012_v38  ;;  %v1754_v44 = vpop.f32.mrb[31].mxu1  ;;  %v1762_v45 = vpop.f32.mrb[35].mxu0 }
0x10f3   :  { %1880 = vpow2.f32 %v1539_v43  ;;  %1129 = vrot.lane.b32.xlu0 %v1537_v35, %s1912_s26 }
0x10fd   :  { %v1881_v46 = vpop.eup %1880 }
0x10fe   :  { %v1016_v47 = vadd.f32 1.0, %v1881_v46 }
0x1100   :  { %1882 = vrcp.f32 %v1016_v47 }
0x110a   :  { %v1883_v49 = vpop.eup %1882 }
0x110b   :  { %v1070_v50 = vmul.f32 %v1883_v49, %v960_v33 }
0x110d   :  { %v1071_v51 = vpack.c.bf16 %v1070_v50, %v1070_v50 }
0x110f   :  { %1768 = vmatmul.mubr.msk.bf16.vlgmr.msra.gmra.mrb[32].mxu1 %vm22_vm0, %v1071_v51 }
0x1110   :  { %1780 = vmatpush3.bf16.msra.mxu1 %v1986_v7  ;;  %1783 = vmatprep.mubr.msk.bf16.mxu1 %vm1911_vm1, %v1910_v0 }
0x1111   :  { %1781 = vmatprep.subr.bf16.mxu1 %v1910_v0 }
0x1114   :  { %1782 = vmatpush3.bf16.msra.mxu1 %v1992_v8 }
0x1115   :  { %1795 = vmatprep.subr.bf16.mxu1 %v1910_v0 }
0x1161   :  { %v1061_v59 = vpop.permute.xlu0 %1060 }
0x1162   :  { %v1063_v60 = vadd.f32 %v1537_v35, %v1061_v59 }
0x1164   :  { %v1541_v61 = vmul.f32 -1.442695, %v1063_v60 }
0x1165   :  { %v1130_v11 = vpop.permute.xlu0 %1129 }
0x11e2   :  { %v1109_v52 = vpop.f32.mrb[32].mxu1 }
0x11e3   :  { %1116 = vrot.lane.b32.xlu1 %v1109_v52, %s1912_s26  ;;  %v1769_v53 = vpop.f32.mrb[33].mxu1 }
0x11e4   :  { %v1112_v54 = vpop.f32.mrb[34].mxu1 }
0x11e5   :  { %v1770_v55 = vpop.f32.mrb[35].mxu1  ;;  %v1549_v54 = vld [vmem:[%s2296_s0 + $0x38] sm:$0xff] }
0x1255   :  { %v1117_v56 = vpop.permute.xlu1 %1116 }
0x1256   :  { %v1119_v57 = vadd.f32 %v1537_v35, %v1117_v56 }
0x1258   :  { %1884 = vtanh.f32 %v1119_v57 }
0x1259   :  { %1886 = vpow2.f32 %v1541_v61 }
0x1262   :  { %v1885_v58 = vpop.eup %1884 }
0x1263   :  { %1124 = vrot.lane.b32.xlu1 %v1885_v58, %s1914_s28  ;;  %v1887_v62 = vpop.eup %1886 }
0x1264   :  { %v1067_v63 = vadd.f32 1.0, %v1887_v62 }
0x1266   :  { %1888 = vrcp.f32 %v1067_v63 }
0x1270   :  { %v1889_v3 = vpop.eup %1888 }
0x1271   :  { %v1122_v4 = vsub.f32 1.0, %v1889_v3  ;;  %v1121_v13 = vmul.f32 %v1889_v3, %v2174_v31 }
0x12d5   :  { %v1125_v10 = vpop.permute.xlu1 %1124 }
0x12d6   :  { %v1127_v12 = vmul.f32 %v1125_v10, %v1122_v4 }
0x12d8   :  { %v1132_v14 = vmul.f32 %v1130_v11, %v1127_v12 }
0x12da   :  { %v2214_v15 = vadd.f32 %v1132_v14, %v1121_v13 }
0x12dc   :  { %1243 = vrot.lane.b32.xlu0 %v2214_v15, %s1914_s28  ;;  %v1137_v16 = vpack.c.bf16 %v2214_v15, %v2214_v15  ;;  %1134 = vst.msk [vmem:[%s2297_s4 + $0x8] sm:$0xff] %vm421_vm2, %v2214_v15 }
0x12de   :  { %1139 = vrot.lane.b32.xlu1 %v1137_v16, %s1914_s28 }
0x134e   :  { %v1244_v30 = vpop.permute.xlu0 %1243 }
0x1350   :  { %v1140_v17 = vpop.permute.xlu1 %1139 }
0x1351   :  { %1776 = vmatmul.mubr.msk.bf16.vlgmr.msra.gmra.mrb[36].mxu0 %vm22_vm0, %v1140_v17  ;;  %1784 = vmatmul.mubr.msk.bf16.vlgmr.msra.gmra.mrb[36].mxu1 %vm22_vm0, %v1140_v17 }
0x1352   :  { %1788 = vmatpush3.bf16.msra.mxu0 %v1972_v5  ;;  %1791 = vmatprep.mubr.msk.bf16.mxu0 %vm1911_vm1, %v1910_v0 }
0x1353   :  { %1789 = vmatprep.subr.bf16.mxu0 %v1910_v0  ;;  %1796 = vmatpush3.bf16.msra.mxu1 %v1944_v1 }
0x1354   :  { %1797 = vmatprep.subr.bf16.mxu1 %v1910_v0  ;;  %1799 = vmatprep.mubr.msk.bf16.mxu1 %vm1911_vm1, %v1910_v0 }
0x1356   :  { %1790 = vmatpush3.bf16.msra.mxu0 %v1978_v6 }
0x1357   :  { %1803 = vmatprep.subr.bf16.mxu0 %v1910_v0  ;;  %1798 = vmatpush3.bf16.msra.mxu1 %v1957_v2 }
0x1358   :  { %1811 = vmatprep.subr.bf16.mxu1 %v1910_v0 }
0x1424   :  { %v1178_v19 = vpop.f32.mrb[36].mxu0  ;;  %v1225_v20 = vpop.f32.mrb[36].mxu1 }
0x1425   :  { %v1184_v1 = vadd.f32 %v1543_v18, %v1178_v19  ;;  %1232 = vrot.lane.b32.xlu0 %v1225_v20, %s1913_s27  ;;  %v1777_v21 = vpop.f32.mrb[37].mxu0  ;;  %v1785_v22 = vpop.f32.mrb[37].mxu1 }
0x1426   :  { %v1181_v23 = vpop.f32.mrb[38].mxu0  ;;  %v1228_v24 = vpop.f32.mrb[38].mxu1 }
0x1427   :  { %v1545_v25 = vmul.f32 -1.442695, %v1184_v1  ;;  %v1778_v26 = vpop.f32.mrb[39].mxu0  ;;  %v1786_v27 = vpop.f32.mrb[39].mxu1 }
0x1429   :  { %1890 = vpow2.f32 %v1545_v25  ;;  %1305 = vrot.lane.b32.xlu0 %v1543_v18, %s1912_s26 }
0x1433   :  { %v1891_v2 = vpop.eup %1890 }
0x1434   :  { %v1188_v28 = vadd.f32 1.0, %v1891_v2 }
0x1436   :  { %1892 = vrcp.f32 %v1188_v28 }
0x1440   :  { %v1893_v29 = vpop.eup %1892 }
0x1441   :  { %v1246_v31 = vmul.f32 %v1893_v29, %v1244_v30 }
0x1443   :  { %v1247_v32 = vpack.c.bf16 %v1246_v31, %v1246_v31 }
0x1445   :  { %1792 = vmatmul.mubr.msk.bf16.vlgmr.msra.gmra.mrb[40].mxu0 %vm22_vm0, %v1247_v32 }
0x1446   :  { %1804 = vmatpush3.bf16.msra.mxu0 %v1986_v7  ;;  %1807 = vmatprep.mubr.msk.bf16.mxu0 %vm1911_vm1, %v1910_v0 }
0x1447   :  { %1805 = vmatprep.subr.bf16.mxu0 %v1910_v0 }
0x144a   :  { %1806 = vmatpush3.bf16.msra.mxu0 %v1992_v8 }
0x1497   :  { %v1233_v7 = vpop.permute.xlu0 %1232 }
0x1498   :  { %v1235_v40 = vadd.f32 %v1543_v18, %v1233_v7 }
0x149a   :  { %v1547_v41 = vmul.f32 -1.442695, %v1235_v40 }
0x149b   :  { %v1306_v46 = vpop.permute.xlu0 %1305 }
0x1518   :  { %v1285_v33 = vpop.f32.mrb[40].mxu0 }
0x1519   :  { %1292 = vrot.lane.b32.xlu1 %v1285_v33, %s1912_s26  ;;  %v1793_v34 = vpop.f32.mrb[41].mxu0 }
0x151a   :  { %v1288_v35 = vpop.f32.mrb[42].mxu0 }
0x151b   :  { %v1794_v36 = vpop.f32.mrb[43].mxu0 }
0x158b   :  { %v1293_v37 = vpop.permute.xlu1 %1292 }
0x158c   :  { %v1295_v38 = vadd.f32 %v1543_v18, %v1293_v37 }
0x158e   :  { %1894 = vtanh.f32 %v1295_v38 }
0x158f   :  { %1896 = vpow2.f32 %v1547_v41 }
0x1598   :  { %v1895_v39 = vpop.eup %1894 }
0x1599   :  { %1300 = vrot.lane.b32.xlu1 %v1895_v39, %s1914_s28  ;;  %v1897_v42 = vpop.eup %1896 }
0x159a   :  { %v1239_v43 = vadd.f32 1.0, %v1897_v42 }
0x159c   :  { %1898 = vrcp.f32 %v1239_v43 }
0x15a6   :  { %v1899_v8 = vpop.eup %1898 }
0x15a7   :  { %v1298_v44 = vsub.f32 1.0, %v1899_v8  ;;  %v1297_v49 = vmul.f32 %v1899_v8, %v2214_v15 }
0x160b   :  { %v1301_v45 = vpop.permute.xlu1 %1300 }
0x160c   :  { %v1303_v47 = vmul.f32 %v1301_v45, %v1298_v44 }
0x160e   :  { %v1308_v50 = vmul.f32 %v1306_v46, %v1303_v47 }
0x1610   :  { %v1309_v51 = vadd.f32 %v1308_v50, %v1297_v49 }
0x1612   :  { %1422 = vrot.lane.b32.xlu0 %v1309_v51, %s1914_s28  ;;  %v1317_v52 = vpack.c.bf16 %v1309_v51, %v1309_v51 }
0x1614   :  { %1319 = vrot.lane.b32.xlu1 %v1317_v52, %s1914_s28 }
0x1684   :  { %v1423_v4 = vpop.permute.xlu0 %1422 }
0x1686   :  { %v1320_v53 = vpop.permute.xlu1 %1319 }
0x1687   :  { %1800 = vmatmul.mubr.msk.bf16.vlgmr.msra.gmra.mrb[40].mxu1 %vm22_vm0, %v1320_v53  ;;  %1808 = vmatmul.mubr.msk.bf16.vlgmr.msra.gmra.mrb[44].mxu0 %vm22_vm0, %v1320_v53 }
0x1688   :  { %1812 = vmatpush3.bf16.msra.mxu1 %v1972_v5  ;;  %1815 = vmatprep.mubr.msk.bf16.mxu1 %vm1911_vm1, %v1910_v0 }
0x1689   :  { %1813 = vmatprep.subr.bf16.mxu1 %v1910_v0 }
0x168c   :  { %1814 = vmatpush3.bf16.msra.mxu1 %v1978_v6 }
0x175a   :  { %v1358_v55 = vpop.f32.mrb[40].mxu1  ;;  %v1405_v56 = vpop.f32.mrb[44].mxu0 }
0x175b   :  { %v1364_v57 = vadd.f32 %v1549_v54, %v1358_v55  ;;  %v1801_v58 = vpop.f32.mrb[41].mxu1  ;;  %1412 = vrot.lane.b32.xlu0 %v1405_v56, %s1913_s27  ;;  %v1809_v59 = vpop.f32.mrb[45].mxu0 }
0x175c   :  { %v1361_v60 = vpop.f32.mrb[42].mxu1  ;;  %v1408_v5 = vpop.f32.mrb[46].mxu0 }
0x175d   :  { %v1551_v61 = vmul.f32 -1.442695, %v1364_v57  ;;  %v1802_v62 = vpop.f32.mrb[43].mxu1  ;;  %v1810_v63 = vpop.f32.mrb[47].mxu0 }
0x175f   :  { %1900 = vpow2.f32 %v1551_v61  ;;  %1484 = vrot.lane.b32.xlu0 %v1549_v54, %s1912_s26 }
0x1763   :  { %1311 = vrot.lane.b32.xlu0 %v1309_v51, %s1913_s27 }
0x1769   :  { %v1901_v0 = vpop.eup %1900 }
0x176a   :  { %v1368_v6 = vadd.f32 1.0, %v1901_v0 }
0x176c   :  { %1902 = vrcp.f32 %v1368_v6 }
0x1776   :  { %v1903_v3 = vpop.eup %1902 }
0x1777   :  { %v1425_v10 = vmul.f32 %v1903_v3, %v1423_v4 }
0x1779   :  { %v1426_v11 = vpack.c.bf16 %v1425_v10, %v1425_v10 }
0x177b   :  { %1816 = vmatmul.mubr.msk.bf16.vlgmr.msra.gmra.mrb[44].mxu1 %vm22_vm0, %v1426_v11 }
0x17cd   :  { %v1413_v12 = vpop.permute.xlu0 %1412 }
0x17ce   :  { %v1415_v21 = vadd.f32 %v1549_v54, %v1413_v12 }
0x17d0   :  { %v1553_v22 = vmul.f32 -1.442695, %v1415_v21 }
0x17d1   :  { %v1485_v13 = vpop.permute.xlu0 %1484 }
0x17d5   :  { %v1312_v14 = vpop.permute.xlu0 %1311 }
0x17d6   :  { %1314 = vst.msk [vmem:[%s2297_s4 + $0x8] sm:$0xff] %vm602_vm3, %v1312_v14 }
0x184e   :  { %v1464_v15 = vpop.f32.mrb[44].mxu1 }
0x184f   :  { %1471 = vrot.lane.b32.xlu1 %v1464_v15, %s1912_s26  ;;  %v1817_v16 = vpop.f32.mrb[45].mxu1 }
0x1850   :  { %v1467_v17 = vpop.f32.mrb[46].mxu1 }
0x1851   :  { %v1818_v18 = vpop.f32.mrb[47].mxu1 }
0x18c1   :  { %v1472_v19 = vpop.permute.xlu1 %1471 }
0x18c2   :  { %v1474_v20 = vadd.f32 %v1549_v54, %v1472_v19 }
0x18c4   :  { %1904 = vtanh.f32 %v1474_v20 }
0x18c5   :  { %1906 = vpow2.f32 %v1553_v22 }
0x18ce   :  { %v1905_v1 = vpop.eup %1904 }
0x18cf   :  { %1479 = vrot.lane.b32.xlu1 %v1905_v1, %s1914_s28  ;;  %v1907_v23 = vpop.eup %1906 }
0x18d0   :  { %v1419_v24 = vadd.f32 1.0, %v1907_v23 }
0x18d2   :  { %1908 = vrcp.f32 %v1419_v24 }
0x18d3   :  { %599 = vrot.lane.b32.xlu1 %v2102_v9, %s1913_s27 }
0x18d7   :  { %779 = vrot.lane.b32.xlu1 %v2138_v48, %s1912_s26 }
0x18dc   :  { %v1909_v25 = vpop.eup %1908 }
0x18dd   :  { %v1477_v26 = vsub.f32 1.0, %v1909_v25  ;;  %v1476_v29 = vmul.f32 %v1909_v25, %v1309_v51 }
0x1941   :  { %v1480_v27 = vpop.permute.xlu1 %1479 }
0x1942   :  { %v1482_v2 = vmul.f32 %v1480_v27, %v1477_v26 }
0x1944   :  { %v1487_v28 = vmul.f32 %v1485_v13, %v1482_v2 }
0x1945   :  { %v600_v30 = vpop.permute.xlu1 %599 }
0x1946   :  { %603 = vst.msk [vmem:[%s2297_s4] sm:$0xff] %vm602_vm3, %v600_v30  ;;  %v1488_v9 = vadd.f32 %v1487_v28, %v1476_v29 }
0x1948   :  { %1494 = vrot.lane.b32.xlu1 %v1488_v9, %s1914_s28  ;;  %1490 = vrot.lane.b32.xlu0 %v1488_v9, %s1912_s26 }
0x1949   :  { %v780_v48 = vpop.permute.xlu1 %779 }
0x194a   :  { %783 = vst.msk [vmem:[%s2297_s4] sm:$0xff] %vm782_vm4, %v780_v48 }
0x19ba   :  { %v1495_v31 = vpop.permute.xlu1 %1494  ;;  %v1491_v32 = vpop.permute.xlu0 %1490 }
0x19bb   :  { %1497 = vst.msk [vmem:[#allocation2] sm:$0xff] %vm22_vm0, %v1495_v31 }
0x19bc   :  { %1493 = vst.msk [vmem:[%s2297_s4 + $0x8] sm:$0xff] %vm782_vm4, %v1491_v32 }

</bundles_post_ra>
